<compile_context>
chip_gen: v5e
topology: v5e:2x2
jax: 0.10.0
libtpu: 0.0.40
codegen_flags: <defaults>
</compile_context>

<pallas_src>
import numpy as np
import jax
import jax.numpy as jnp
from jax.experimental import pallas as pl
from jax.experimental.pallas import tpu as pltpu


_TILED_PARAMS = pltpu.CompilerParams(
    dimension_semantics=("parallel", "arbitrary"),
    vmem_limit_bytes=48 * 1024 * 1024,   # <= v7x 64 MiB physical; plenty for v5e/v6e
)


# ----------------------------------------------------------------------------
# Kernels
# ----------------------------------------------------------------------------
def gcn_layer1_kernel(kblk_ref, nnz_ref, a_ref, xt_ref, v_ref, w2_ref, z2_ref, acc_ref):
    """Layer 1 (rank-1 features): acc = sum_k A_ik @ x_k (a (tm,1) column); the
    finalize expands Z2 = BN(relu(acc * w1_row + b1)) @ W2."""
    i = pl.program_id(0)
    k = pl.program_id(1)

    @pl.when(k == 0)
    def _():
        acc_ref[...] = jnp.zeros_like(acc_ref)

    @pl.when(k < nnz_ref[i])                                   # skip padded source blocks
    def _():
        acc_ref[...] += jnp.sum(a_ref[...] * xt_ref[...], axis=-1, keepdims=True)

    @pl.when(k == pl.num_programs(1) - 1)
    def _():
        h = jnp.maximum(acc_ref[...] * v_ref[0:1, :] + v_ref[1:2, :], 0.0)   # W1 + b1 + ReLU
        # BatchNorm1d(128), eval mode (gamma, beta, running mean/var).
        h = (h - v_ref[4:5, :]) * jax.lax.rsqrt(v_ref[5:6, :] + 1e-5) \
            * v_ref[2:3, :] + v_ref[3:4, :]
        # dropout = identity at inference; fold next layer's weight.
        z2_ref[...] = jnp.dot(h.astype(jnp.bfloat16), w2_ref[...],
                              preferred_element_type=jnp.float32).astype(z2_ref.dtype)


def gcn_layer_kernel(kblk_ref, nnz_ref, a_ref, z_ref, b_ref, wn_ref, zn_ref, acc_ref):
    """Generic GCN layer: Z_next = relu(A @ Z + b) @ W_next over nonzero A blocks."""
    i = pl.program_id(0)
    k = pl.program_id(1)

    @pl.when(k == 0)
    def _():
        acc_ref[...] = jnp.zeros_like(acc_ref)

    @pl.when(k < nnz_ref[i])                                   # skip padded source blocks
    def _():
        acc_ref[...] += jnp.dot(a_ref[...], z_ref[...],
                                preferred_element_type=jnp.float32)

    @pl.when(k == pl.num_programs(1) - 1)
    def _():
        h = jnp.maximum(acc_ref[...] + b_ref[...], 0.0)        # bias + ReLU
        zn_ref[...] = jnp.dot(h.astype(jnp.bfloat16), wn_ref[...],
                              preferred_element_type=jnp.float32).astype(zn_ref.dtype)


def gat_kernel(kblk_ref, nnz_ref, mask_ref, whq_ref, whk_ref, asrc_ref, gb_ref,
               emb_ref, m_sc, acc_sc):
    """Single-head GAT(64->64): flash-style masked online softmax over the nonzero
    source blocks.  wh lanes: [Wh(0:64) | 1.0 | a_dst | a_src | 0...]; the constant
    lane 64 folds the softmax row-sum into the MXU (acc lane 64 == sum p)."""
    i = pl.program_id(0)
    k = pl.program_id(1)

    @pl.when(k == 0)
    def _():
        m_sc[...] = jnp.full_like(m_sc, -1e30)                 # finite sentinel, no inf-inf
        acc_sc[...] = jnp.zeros_like(acc_sc)

    @pl.when(k < nnz_ref[i])                                   # skip padded source blocks
    def _():
        whq = whq_ref[...]
        a_dst = whq[:, 65:66].astype(jnp.float32)              # hoisted target logit (tm,1)
        e = a_dst + asrc_ref[...]                              # (tm,1)+(1,tk) -> (tm,tk)
        e = jnp.where(e > 0, e, 0.2 * e)                       # LeakyReLU(0.2)
        mask = mask_ref[...].astype(jnp.float32) > 0.0         # int8 adjacency mask
        e_m = jnp.where(mask, e, -1e30)                        # mask BEFORE the running max
        m_new = jnp.maximum(m_sc[...], jnp.max(e_m, axis=-1, keepdims=True))
        corr = jnp.exp(m_sc[...] - m_new)
        p = jnp.where(mask, jnp.exp(e - m_new), 0.0)           # exact, robust to empty tiles
        # p @ [Wh | 1 | ...]: lane 64 of the accumulator is the softmax denominator.
        acc_sc[...] = corr * acc_sc[...] + jnp.dot(
            p.astype(jnp.bfloat16), whk_ref[...], preferred_element_type=jnp.float32)
        m_sc[...] = m_new

    @pl.when(k == pl.num_programs(1) - 1)
    def _():
        acc = acc_sc[...]
        inv_l = pl.reciprocal(acc[:, 64:65], approx=True)      # l >= 1 (self-loop term)
        emb_ref[...] = acc[:, :64] * inv_l + gb_ref[...]       # + GAT bias


def pool_mlp_kernel(emb_ref, s_ref, gid_ref, f1w_ref, f2w_ref, pv_ref, out_ref,
                    mean_acc, max_acc):
    """relu(embeddings) -> node-tiled global mean/max pool -> fc1 -> relu -> fc2."""
    t = pl.program_id(0)

    @pl.when(t == 0)
    def _():
        mean_acc[...] = jnp.zeros_like(mean_acc)
        max_acc[...] = jnp.zeros_like(max_acc)                 # relu output >= 0 -> 0 identity

    h = jnp.maximum(emb_ref[...], 0.0)                         # (tn, 64)
    # Mean pool: 1/|V_g| is pre-folded into the rows of S; accumulate on the MXU.
    mean_acc[...] += jnp.dot(s_ref[...], h, preferred_element_type=jnp.float32)
    # Max pool: per-graph masked max of this node tile (small static G loop).
    gid = gid_ref[...]                                         # (tn, 1) int32
    rows = [jnp.max(jnp.where(gid == g, h, 0.0), axis=0, keepdims=True)
            for g in range(s_ref.shape[0])]
    max_acc[...] = jnp.maximum(max_acc[...], jnp.concatenate(rows, axis=0))

    @pl.when(t == pl.num_programs(0) - 1)
    def _():
        pv = pv_ref[...]
        pooled = jnp.concatenate([mean_acc[...], max_acc[...]], axis=-1)     # (Gp, 128)
        z = jnp.maximum(
            jnp.dot(pooled, f1w_ref[...], preferred_element_type=jnp.float32)
            + pv[:, :64], 0.0)
        out_ref[...] = jnp.dot(z, f2w_ref[...],
                               preferred_element_type=jnp.float32) + pv[:, 64:65]


# ----------------------------------------------------------------------------
# pallas_call wrappers
# ----------------------------------------------------------------------------
def _gcn_layer1(kblk, nnz, a_hat, xt, v1, w2, *, tblk):
    n = a_hat.shape[0]
    fnext = w2.shape[1]
    max_nnz = kblk.shape[1]
    return pl.pallas_call(
        gcn_layer1_kernel,
        out_shape=jax.ShapeDtypeStruct((n, fnext), jnp.bfloat16),
        grid_spec=pltpu.PrefetchScalarGridSpec(
            num_scalar_prefetch=2, grid=(n // tblk, max_nnz),
            in_specs=[
                pl.BlockSpec((tblk, tblk), lambda i, k, kb, nz: (i, kb[i, k])),  # Â tile
                pl.BlockSpec((1, tblk), lambda i, k, kb, nz: (0, kb[i, k])),     # x row (f_in=1)
                pl.BlockSpec((8, 128), lambda i, k, kb, nz: (0, 0)),             # packed layer-1 vecs
                pl.BlockSpec((128, fnext), lambda i, k, kb, nz: (0, 0)),         # W2
            ],
            out_specs=pl.BlockSpec((tblk, fnext), lambda i, k, kb, nz: (i, 0)),
            scratch_shapes=[pltpu.VMEM((tblk, 1), jnp.float32)],
        ),
        compiler_params=_TILED_PARAMS,
    )(kblk, nnz, a_hat, xt, v1, w2)


def _gcn_layer(kblk, nnz, a_hat, z, bias, w_next, *, tblk):
    n = a_hat.shape[0]
    fin = z.shape[1]
    fnext = w_next.shape[1]
    max_nnz = kblk.shape[1]
    return pl.pallas_call(
        gcn_layer_kernel,
        out_shape=jax.ShapeDtypeStruct((n, fnext), jnp.bfloat16),
        grid_spec=pltpu.PrefetchScalarGridSpec(
            num_scalar_prefetch=2, grid=(n // tblk, max_nnz),
            in_specs=[
                pl.BlockSpec((tblk, tblk), lambda i, k, kb, nz: (i, kb[i, k])),  # Â tile
                pl.BlockSpec((tblk, fin), lambda i, k, kb, nz: (kb[i, k], 0)),   # Z source rows
                pl.BlockSpec((1, fin), lambda i, k, kb, nz: (0, 0)),             # bias
                pl.BlockSpec((fin, fnext), lambda i, k, kb, nz: (0, 0)),         # W_next
            ],
            out_specs=pl.BlockSpec((tblk, fnext), lambda i, k, kb, nz: (i, 0)),
            scratch_shapes=[pltpu.VMEM((tblk, fin), jnp.float32)],
        ),
        compiler_params=_TILED_PARAMS,
    )(kblk, nnz, a_hat, z, bias, w_next)


def _gat(kblk, nnz, adj_mask, wh128, asrc_row, gat_bias, *, tblk):
    n = adj_mask.shape[0]
    max_nnz = kblk.shape[1]
    return pl.pallas_call(
        gat_kernel,
        out_shape=jax.ShapeDtypeStruct((n, 64), jnp.float32),
        grid_spec=pltpu.PrefetchScalarGridSpec(
            num_scalar_prefetch=2, grid=(n // tblk, max_nnz),
            in_specs=[
                pl.BlockSpec((tblk, tblk), lambda i, k, kb, nz: (i, kb[i, k])),  # int8 mask
                pl.BlockSpec((tblk, 128), lambda i, k, kb, nz: (i, 0)),          # Wh target rows
                pl.BlockSpec((tblk, 128), lambda i, k, kb, nz: (kb[i, k], 0)),   # Wh source rows
                pl.BlockSpec((1, tblk), lambda i, k, kb, nz: (0, kb[i, k])),     # a_src row (lane-dense)
                pl.BlockSpec((1, 64), lambda i, k, kb, nz: (0, 0)),              # GAT bias
            ],
            out_specs=pl.BlockSpec((tblk, 64), lambda i, k, kb, nz: (i, 0)),
            scratch_shapes=[pltpu.VMEM((tblk, 1), jnp.float32),      # running max
                            pltpu.VMEM((tblk, 128), jnp.float32)],   # acc (+ denom in lane 64)
        ),
        compiler_params=_TILED_PARAMS,
    )(kblk, nnz, adj_mask, wh128, wh128, asrc_row, gat_bias)


def _pool_mlp(emb, s_scaled, gid, f1w, f2w, pv, *, tblk):
    n = emb.shape[0]
    gp = s_scaled.shape[0]
    return pl.pallas_call(
        pool_mlp_kernel,
        out_shape=jax.ShapeDtypeStruct((gp, 1), jnp.float32),
        grid_spec=pltpu.PrefetchScalarGridSpec(
            num_scalar_prefetch=0, grid=(n // tblk,),
            in_specs=[
                pl.BlockSpec((tblk, 64), lambda t: (t, 0)),          # node embedding tile
                pl.BlockSpec((gp, tblk), lambda t: (0, t)),          # mean-pool matrix tile
                pl.BlockSpec((tblk, 1), lambda t: (t, 0)),           # graph ids
                pl.BlockSpec((128, 64), lambda t: (0, 0)),           # fc1 weight
                pl.BlockSpec((64, 1), lambda t: (0, 0)),             # fc2 weight
                pl.BlockSpec((1, 128), lambda t: (0, 0)),            # packed fc biases
            ],
            out_specs=pl.BlockSpec((gp, 1), lambda t: (0, 0)),
            scratch_shapes=[pltpu.VMEM((gp, 64), jnp.float32),       # mean accumulator
                            pltpu.VMEM((gp, 64), jnp.float32)],      # max accumulator
        ),
        compiler_params=pltpu.CompilerParams(
            dimension_semantics=("arbitrary",),
            vmem_limit_bytes=48 * 1024 * 1024),
    )(emb, s_scaled, gid, f1w, f2w, pv)


def gnn_forward(a_hat, adj_mask, x, s_scaled, gid, kblk, nnz, params, *,
                tblk=256, num_graphs=None):
    """Full EnhancedGNNWithEmbeddings forward. Returns (graph_pred, node_embeddings)."""
    n = x.shape[0]
    assert n % tblk == 0 and tblk % 128 == 0, "pad N to a multiple of the Â tile"
    p = params
    xt = jnp.reshape(x, (1, n)).astype(jnp.float32)      # lane-dense node features (f_in = 1)

    z2 = _gcn_layer1(kblk, nnz, a_hat, xt, p["v1"], p["w2"], tblk=tblk)     # (N,256) bf16
    z3 = _gcn_layer(kblk, nnz, a_hat, z2, p["b2"], p["w3"], tblk=tblk)      # (N,128) bf16
    z4 = _gcn_layer(kblk, nnz, a_hat, z3, p["b3"], p["w4p"], tblk=tblk)     # (N,128) bf16 (lanes 64: zero-padded)
    wh = _gcn_layer(kblk, nnz, a_hat, z4, p["b4p"], p["awx"], tblk=tblk)    # (N,128) bf16 [Wh|.|a_dst|a_src|0]
    # Lane 64 := 1.0 so the GAT MXU matmul also produces the softmax row-sum;
    # expose a_src as a (1, N) lane-dense row (layout plumbing, one-time O(N)).
    wh = wh.at[:, 64].set(1.0)
    asrc_row = wh[:, 66].astype(jnp.float32).reshape(1, n)
    emb = _gat(kblk, nnz, adj_mask, wh, asrc_row, p["gb"], tblk=tblk)       # (N,64) f32
    out = _pool_mlp(emb, s_scaled, gid, p["f1w"], p["f2w"], p["pv"], tblk=tblk)
    if num_graphs is not None:
        out = out[:num_graphs]
    return out, emb


# ----------------------------------------------------------------------------
# Glue: adjacency, block schedule, parameters
# ----------------------------------------------------------------------------
def build_gcn_adjacency(edge_index, edge_weight, num_nodes):
    """Dense D^-1/2 (A + I) D^-1/2 with A[target, source] = edge_weight."""
    src, dst = edge_index[0], edge_index[1]
    adj = jnp.zeros((num_nodes, num_nodes), jnp.float32)
    adj = adj.at[dst, src].add(edge_weight)
    adj = adj + jnp.eye(num_nodes, dtype=jnp.float32)        # self loops (weight 1.0)
    deg = jnp.sum(adj, axis=1)
    dinv = jnp.where(deg > 0, jax.lax.rsqrt(deg), 0.0)
    return dinv[:, None] * adj * dinv[None, :]


def build_block_schedule(batch, num_nodes, tblk):
    """Per row-block list of source blocks where the block-diagonal Â can be
    nonzero (same-graph blocks + diagonal self-loop blocks).  Padded entries
    repeat the last valid block and are skipped in-kernel via the nnz guard."""
    batch = np.asarray(batch).reshape(-1)
    nb = num_nodes // tblk
    nz = np.zeros((nb, nb), dtype=bool)
    np.fill_diagonal(nz, True)
    for g in np.unique(batch):
        blocks = np.unique(np.flatnonzero(batch == g) // tblk)
        nz[np.ix_(blocks, blocks)] = True
    nnz = nz.sum(axis=1).astype(np.int32)
    max_nnz = int(nnz.max())
    kblk = np.zeros((nb, max_nnz), dtype=np.int32)
    for i in range(nb):
        idx = np.flatnonzero(nz[i])
        kblk[i, :idx.size] = idx
        kblk[i, idx.size:] = idx[-1]
    return jnp.asarray(kblk), jnp.asarray(nnz)


def init_params(key):
    """Deterministic parameter init matching the module's __init__ shapes."""
    def lin(k, fan_in, fan_out):
        k1, k2 = jax.random.split(k)
        bound = float(fan_in) ** -0.5
        w = jax.random.uniform(k1, (fan_in, fan_out), jnp.float32, -bound, bound)
        b = jax.random.uniform(k2, (1, fan_out), jnp.float32, -bound, bound)
        return w, b

    keys = jax.random.split(key, 9)
    w1, b1 = lin(keys[0], 1, 128)        # GCNConv1 (num_node_features = 1)
    w2, b2 = lin(keys[1], 128, 256)      # GCNConv2
    w3, b3 = lin(keys[2], 256, 128)      # GCNConv3
    w4, b4 = lin(keys[3], 128, 64)       # GCNConv4
    aw, _ = lin(keys[4], 64, 64)         # GATConv(64, 64, heads=1)
    att_src = 0.1 * jax.random.normal(keys[5], (64,), jnp.float32)
    att_dst = 0.1 * jax.random.normal(keys[6], (64,), jnp.float32)
    gat_b = jnp.zeros((1, 64), jnp.float32)
    f1w, f1b = lin(keys[7], 128, 64)     # fc1
    f2w, f2b = lin(keys[8], 64, 1)       # fc2

    # BatchNorm1d(128) defaults: gamma=1, beta=0, running_mean=0, running_var=1.
    gamma = jnp.ones((128,), jnp.float32)
    beta = jnp.zeros((128,), jnp.float32)
    rmean = jnp.zeros((128,), jnp.float32)
    rvar = jnp.ones((128,), jnp.float32)

    # Packed layer-1 / BN vectors (one DMA instead of many sub-KiB DMAs).
    v1 = (jnp.zeros((8, 128), jnp.float32)
          .at[0].set(w1[0]).at[1].set(b1[0]).at[2].set(gamma)
          .at[3].set(beta).at[4].set(rmean).at[5].set(rvar))

    # Pad the 64-wide GCN4 path to 128 lanes (lane-dense stores).
    w4p = jnp.zeros((128, 128), jnp.float32).at[:, :64].set(w4)
    b4p = jnp.zeros((1, 128), jnp.float32).at[:, :64].set(b4)

    # GAT weight extended: lanes 0:64 = Wh, 65 = Wh.att_dst, 66 = Wh.att_src
    # (lane 64 is set to 1.0 post-hoc for the MXU-folded softmax row-sum).
    awx = (jnp.zeros((128, 128), jnp.float32)
           .at[:64, :64].set(aw)
           .at[:64, 65].set(aw @ att_dst)
           .at[:64, 66].set(aw @ att_src))

    pv = (jnp.zeros((1, 128), jnp.float32)
          .at[:, :64].set(f1b).at[:, 64:65].set(f2b))

    bf = jnp.bfloat16
    return dict(
        v1=v1,
        w2=w2.astype(bf), b2=b2,
        w3=w3.astype(bf), b3=b3,
        w4p=w4p.astype(bf), b4p=b4p,
        awx=awx.astype(bf), gb=gat_b,
        f1w=f1w, f2w=f2w, pv=pv,
    )


# ----------------------------------------------------------------------------
# Demo
# ----------------------------------------------------------------------------
if __name__ == "__main__":
    key = jax.random.PRNGKey(0)
    k_x, k_w, k_p = jax.random.split(key, 3)

    # 8 graphs x 64 nodes (ring topology), 1 node feature -> N = 512.
    # tblk=256 gives 2 row blocks (megacore-friendly) and a block-diagonal
    # schedule with a single source block per row block (skips 2 of 4 Â tiles).
    num_graphs = 8
    nodes_per_graph = 64
    num_nodes = num_graphs * nodes_per_graph
    tblk = 256

    src_list, dst_list = [], []
    for g in range(num_graphs):
        base = g * nodes_per_graph
        for i in range(nodes_per_graph):
            j = (i + 1) % nodes_per_graph
            src_list += [base + i, base + j]      # undirected edge, both directions
            dst_list += [base + j, base + i]
    edge_index = jnp.array([src_list, dst_list], dtype=jnp.int32)
    num_edges = edge_index.shape[1]
    ew_half = jax.random.uniform(k_w, (num_edges // 2,), jnp.float32, 0.5, 1.5)
    edge_weight = jnp.repeat(ew_half, 2)          # same weight both directions

    x = jax.random.normal(k_x, (num_nodes, 1), jnp.float32)   # standardized features

    batch = jnp.arange(num_nodes, dtype=jnp.int32) // nodes_per_graph
    gp = max(8, ((num_graphs + 7) // 8) * 8)      # pad graph rows to a sublane multiple
    onehot = (batch[None, :] ==
              jnp.arange(gp, dtype=jnp.int32)[:, None]).astype(jnp.float32)
    counts = jnp.maximum(jnp.sum(onehot, axis=1, keepdims=True), 1.0)
    s_scaled = onehot / counts                    # 1/|V_g| folded into the mean-pool matrix
    gid = batch.reshape(num_nodes, 1)             # per-node graph id for max pool

    a_hat_f32 = build_gcn_adjacency(edge_index, edge_weight, num_nodes)
    a_hat = a_hat_f32.astype(jnp.bfloat16)                      # GCN streaming operand
    adj_mask = (a_hat_f32 != 0).astype(jnp.int8)                # half-width mask for the GAT pass
    kblk, nnz = build_block_schedule(batch, num_nodes, tblk)

    params = init_params(k_p)

    graph_out, node_embeddings = gnn_forward(
        a_hat, adj_mask, x, s_scaled, gid, kblk, nnz, params,
        tblk=tblk, num_graphs=num_graphs)
    jax.block_until_ready((graph_out, node_embeddings))
    assert graph_out.shape == (num_graphs, 1)
    assert node_embeddings.shape == (num_nodes, 64)
    assert bool(jnp.all(jnp.isfinite(graph_out)))
    print("KERNEL_OK")
</pallas_src>

<mosaic_0001>
module attributes {stable_mosaic.version = 11 : i64} {
  func.func @gcn_layer1_kernel(%arg0: i32, %arg1: i32, %arg2: memref<2x1xi32, #tpu.memory_space<smem>>, %arg3: memref<2xi32, #tpu.memory_space<smem>>, %arg4: memref<256x256xbf16, #tpu.memory_space<vmem>>, %arg5: memref<1x256xf32, #tpu.memory_space<vmem>>, %arg6: memref<8x128xf32, #tpu.memory_space<vmem>>, %arg7: memref<128x256xbf16, #tpu.memory_space<vmem>>, %arg8: memref<256x256xbf16, #tpu.memory_space<vmem>>, %arg9: memref<256x1xf32, #tpu.memory_space<vmem>>) attributes {dimension_semantics = [#tpu.dimension_semantics<parallel>, #tpu.dimension_semantics<arbitrary>], iteration_bounds = array<i64: 2, 1>, scalar_prefetch = 2 : i64, scratch_operands = 1 : i64, tpu.core_type = #tpu.core_type<tc>, window_params = [{transform_indices = @transform_0, window_bounds = array<i64: 256, 256>}, {transform_indices = @transform_1, window_bounds = array<i64: 1, 256>}, {pipeline_mode = #tpu.pipeline_mode<synchronous>, transform_indices = @transform_2, window_bounds = array<i64: 8, 128>}, {pipeline_mode = #tpu.pipeline_mode<synchronous>, transform_indices = @transform_3, window_bounds = array<i64: 128, 256>}, {transform_indices = @transform_4, window_bounds = array<i64: 256, 256>}]} {
    %c0_i32 = arith.constant 0 : i32
    %0 = arith.cmpi eq, %arg1, %c0_i32 : i32
    %1 = arith.extui %0 : i1 to i32
    %c0_i32_0 = arith.constant 0 : i32
    %2 = arith.cmpi ne, %1, %c0_i32_0 : i32
    scf.if %2 {
      %cst = arith.constant 0.000000e+00 : f32
      %11 = vector.broadcast %cst : f32 to vector<256x1xf32>
      %c0 = arith.constant 0 : index
      %c0_4 = arith.constant 0 : index
      %12 = vector.load %arg9[%c0, %c0_4] : memref<256x1xf32, #tpu.memory_space<vmem>>, vector<256x1xf32>
      tpu.vector_store %arg9[%c0, %c0_4], %11 {strides = array<i32>} : memref<256x1xf32, #tpu.memory_space<vmem>>, vector<256x1xf32>,
    } else {
    }
    %3 = arith.index_cast %arg0 : i32 to index
    %4 = memref.load %arg3[%3] : memref<2xi32, #tpu.memory_space<smem>>
    %5 = arith.cmpi slt, %arg1, %4 : i32
    %6 = arith.extui %5 : i1 to i32
    %c0_i32_1 = arith.constant 0 : i32
    %7 = arith.cmpi ne, %6, %c0_i32_1 : i32
    scf.if %7 {
      %c0 = arith.constant 0 : index
      %c0_4 = arith.constant 0 : index
      %11 = vector.load %arg9[%c0, %c0_4] : memref<256x1xf32, #tpu.memory_space<vmem>>, vector<256x1xf32>
      %c0_5 = arith.constant 0 : index
      %c0_6 = arith.constant 0 : index
      %12 = vector.load %arg4[%c0_5, %c0_6] : memref<256x256xbf16, #tpu.memory_space<vmem>>, vector<256x256xbf16>
      %c0_7 = arith.constant 0 : index
      %c0_8 = arith.constant 0 : index
      %13 = vector.load %arg5[%c0_7, %c0_8] : memref<1x256xf32, #tpu.memory_space<vmem>>, vector<1x256xf32>
      %14 = arith.extf %12 : vector<256x256xbf16> to vector<256x256xf32>
      %15 = vector.broadcast %13 : vector<1x256xf32> to vector<256x256xf32>
      %16 = arith.mulf %14, %15 : vector<256x256xf32>
      %cst = arith.constant dense<0.000000e+00> : vector<256xf32>
      %17 = vector.multi_reduction <add>, %16, %cst [1] : vector<256x256xf32> to vector<256xf32>
      %18 = vector.shape_cast %17 : vector<256xf32> to vector<256x1xf32>
      %19 = arith.addf %11, %18 : vector<256x1xf32>
      %c0_9 = arith.constant 0 : index
      %c0_10 = arith.constant 0 : index
      %20 = vector.load %arg9[%c0_9, %c0_10] : memref<256x1xf32, #tpu.memory_space<vmem>>, vector<256x1xf32>
      tpu.vector_store %arg9[%c0_9, %c0_10], %19 {strides = array<i32>} : memref<256x1xf32, #tpu.memory_space<vmem>>, vector<256x1xf32>,
    } else {
    }
    %c0_i32_2 = arith.constant 0 : i32
    %8 = arith.cmpi eq, %arg1, %c0_i32_2 : i32
    %9 = arith.extui %8 : i1 to i32
    %c0_i32_3 = arith.constant 0 : i32
    %10 = arith.cmpi ne, %9, %c0_i32_3 : i32
    scf.if %10 {
      %c0 = arith.constant 0 : index
      %c0_4 = arith.constant 0 : index
      %11 = vector.load %arg9[%c0, %c0_4] : memref<256x1xf32, #tpu.memory_space<vmem>>, vector<256x1xf32>
      %c0_5 = arith.constant 0 : index
      %c0_6 = arith.constant 0 : index
      %12 = vector.load %arg6[%c0_5, %c0_6] : memref<8x128xf32, #tpu.memory_space<vmem>>, vector<1x128xf32>
      %13 = vector.broadcast %11 : vector<256x1xf32> to vector<256x128xf32>
      %14 = vector.broadcast %12 : vector<1x128xf32> to vector<256x128xf32>
      %15 = arith.mulf %13, %14 : vector<256x128xf32>
      %c1 = arith.constant 1 : index
      %c0_7 = arith.constant 0 : index
      %16 = vector.load %arg6[%c1, %c0_7] : memref<8x128xf32, #tpu.memory_space<vmem>>, vector<1x128xf32>
      %17 = vector.broadcast %16 : vector<1x128xf32> to vector<256x128xf32>
      %18 = arith.addf %15, %17 : vector<256x128xf32>
      %cst = arith.constant 0.000000e+00 : f32
      %19 = vector.broadcast %cst : f32 to vector<256x128xf32>
      %20 = arith.maximumf %18, %19 : vector<256x128xf32>
      %c4 = arith.constant 4 : index
      %c0_8 = arith.constant 0 : index
      %21 = vector.load %arg6[%c4, %c0_8] : memref<8x128xf32, #tpu.memory_space<vmem>>, vector<1x128xf32>
      %22 = vector.broadcast %21 : vector<1x128xf32> to vector<256x128xf32>
      %23 = arith.subf %20, %22 : vector<256x128xf32>
      %c5 = arith.constant 5 : index
      %c0_9 = arith.constant 0 : index
      %24 = vector.load %arg6[%c5, %c0_9] : memref<8x128xf32, #tpu.memory_space<vmem>>, vector<1x128xf32>
      %cst_10 = arith.constant 9.99999974E-6 : f32
      %25 = vector.broadcast %cst_10 : f32 to vector<1x128xf32>
      %26 = arith.addf %24, %25 : vector<1x128xf32>
      %27 = math.rsqrt %26 : vector<1x128xf32>
      %28 = vector.broadcast %27 : vector<1x128xf32> to vector<256x128xf32>
      %29 = arith.mulf %23, %28 : vector<256x128xf32>
      %c2 = arith.constant 2 : index
      %c0_11 = arith.constant 0 : index
      %30 = vector.load %arg6[%c2, %c0_11] : memref<8x128xf32, #tpu.memory_space<vmem>>, vector<1x128xf32>
      %31 = vector.broadcast %30 : vector<1x128xf32> to vector<256x128xf32>
      %32 = arith.mulf %29, %31 : vector<256x128xf32>
      %c3 = arith.constant 3 : index
      %c0_12 = arith.constant 0 : index
      %33 = vector.load %arg6[%c3, %c0_12] : memref<8x128xf32, #tpu.memory_space<vmem>>, vector<1x128xf32>
      %34 = vector.broadcast %33 : vector<1x128xf32> to vector<256x128xf32>
      %35 = arith.addf %32, %34 : vector<256x128xf32>
      %36 = arith.truncf %35 : vector<256x128xf32> to vector<256x128xbf16>
      %c0_13 = arith.constant 0 : index
      %c0_14 = arith.constant 0 : index
      %37 = vector.load %arg7[%c0_13, %c0_14] : memref<128x256xbf16, #tpu.memory_space<vmem>>, vector<128x256xbf16>
      %cst_15 = arith.constant dense<0.000000e+00> : vector<256x256xf32>
      %38 = tpu.matmul %36, %37, %cst_15 {dimension_numbers = #tpu.dot_dimension_numbers<[1], [0], [0], [1], [0, 0, 1, 1], [], []>} : vector<256x128xbf16>, vector<128x256xbf16>, vector<256x256xf32> -> vector<256x256xf32>
      %39 = arith.truncf %38 : vector<256x256xf32> to vector<256x256xbf16>
      %c0_16 = arith.constant 0 : index
      %c0_17 = arith.constant 0 : index
      %40 = vector.load %arg8[%c0_16, %c0_17] : memref<256x256xbf16, #tpu.memory_space<vmem>>, vector<256x256xbf16>
      tpu.vector_store %arg8[%c0_16, %c0_17], %39 {strides = array<i32>} : memref<256x256xbf16, #tpu.memory_space<vmem>>, vector<256x256xbf16>,
    } else {
    }
    return
  }
  func.func @transform_0(%arg0: i32, %arg1: i32, %arg2: memref<2x1xi32, #tpu.memory_space<smem>>, %arg3: memref<2xi32, #tpu.memory_space<smem>>) -> (i32, i32) {
    %0 = arith.index_cast %arg0 : i32 to index
    %1 = arith.index_cast %arg1 : i32 to index
    %2 = memref.load %arg2[%0, %1] : memref<2x1xi32, #tpu.memory_space<smem>>
    %c0_i32 = arith.constant 0 : i32
    return %arg0, %2 : i32, i32
  }
  func.func @transform_1(%arg0: i32, %arg1: i32, %arg2: memref<2x1xi32, #tpu.memory_space<smem>>, %arg3: memref<2xi32, #tpu.memory_space<smem>>) -> (i32, i32) {
    %0 = arith.index_cast %arg0 : i32 to index
    %1 = arith.index_cast %arg1 : i32 to index
    %2 = memref.load %arg2[%0, %1] : memref<2x1xi32, #tpu.memory_space<smem>>
    %c0_i32 = arith.constant 0 : i32
    %c0_i32_0 = arith.constant 0 : i32
    return %c0_i32, %2 : i32, i32
  }
  func.func @transform_2(%arg0: i32, %arg1: i32, %arg2: memref<2x1xi32, #tpu.memory_space<smem>>, %arg3: memref<2xi32, #tpu.memory_space<smem>>) -> (i32, i32) {
    %c0_i32 = arith.constant 0 : i32
    %c0_i32_0 = arith.constant 0 : i32
    %c0_i32_1 = arith.constant 0 : i32
    return %c0_i32, %c0_i32_0 : i32, i32
  }
  func.func @transform_3(%arg0: i32, %arg1: i32, %arg2: memref<2x1xi32, #tpu.memory_space<smem>>, %arg3: memref<2xi32, #tpu.memory_space<smem>>) -> (i32, i32) {
    %c0_i32 = arith.constant 0 : i32
    %c0_i32_0 = arith.constant 0 : i32
    %c0_i32_1 = arith.constant 0 : i32
    return %c0_i32, %c0_i32_0 : i32, i32
  }
  func.func @transform_4(%arg0: i32, %arg1: i32, %arg2: memref<2x1xi32, #tpu.memory_space<smem>>, %arg3: memref<2xi32, #tpu.memory_space<smem>>) -> (i32, i32) {
    %c0_i32 = arith.constant 0 : i32
    %c0_i32_0 = arith.constant 0 : i32
    return %arg0, %c0_i32 : i32, i32
  }
}

</mosaic_0001>

<bundles_post_ra>
// kernel: tpu_custom_call.1
= control target key start
LH: loop header
LB: loop body
LE: loop exit
PB: predicated region body
PF: predicated region fallthrough
CT: control target
= control target key end

     0   :  { %s2205_s27 = smov [#allocation4]   ;;  %s2206_s28 = smov [#allocation5]   ;;  %s2892_s0 = inlined_call_operand.vmem [shape: s32[2,1], index: 0, kind: input, shape index: {}]   ;;  %s2893_s2 = inlined_call_operand.hbm [shape: bf16[512,512], index: 2, kind: input, shape index: {}]   ;;  %s2894_s3 = inlined_call_operand.vmem [shape: f32[1,512], index: 3, kind: input, shape index: {}]   ;;  %s2895_s4 = inlined_call_operand.hbm [shape: f32[8,128], index: 4, kind: input, shape index: {}]   ;;  %s2896_s5 = inlined_call_operand.hbm [shape: bf16[128,256], index: 5, kind: input, shape index: {}]   ;;  %s2897_s6 = inlined_call_operand.hbm [shape: bf16[512,256], index: 6, kind: output, shape index: {}]   ;;  %s2898_s1 = inlined_call_operand.vmem [shape: s32[2], index: 1, kind: input, shape index: {}]  }
   0x1   :  { %2911 = sst [smem:[#allocation27_spill]] %s2894_s3  ;;  %s12_s23 = sshll.u32 %s2892_s0, 4  ;;  %s13_s23 = int_to_ptr.vmem [resolvable:$true] %s12_s23 }
   0x2   :  { %2912 = sst [smem:[#allocation28_spill]] %s2895_s4  ;;  %s17_s26 = sshll.u32 %s2898_s1, 4  ;;  %s18_s26 = int_to_ptr.vmem [resolvable:$true] %s17_s26 }
   0x3   :  { %2913 = sst [smem:[#allocation29_spill]] %s2896_s5 }
   0x4   :  { %2914 = sst [smem:[#allocation30_spill]] %s2897_s6 }
   0x5   :  { %15 = dma.vmem_to_smem %s13_s23, 32, %s2205_s27, [#allocation3] }
   0x6   :  { %20 = dma.vmem_to_smem %s18_s26, 16, %s2206_s28, [#allocation3] }
   0x7   :  { %2155 = dma.done.wait [#allocation3], 48 }
   0x8   :  { %2156 = vsyncadd [#allocation3], 4294967248 }
   0x9   :  { %23 = sfence }
   0xa   :  { %24 = vsyncpa [#allocation7], 0 }
   0xb   :  { %26 = vsyncpa [#allocation7 + $0x1], 0 }
   0xc   :  { %27 = vsyncpa [#allocation10], 0 }
   0xd   :  { %28 = vsyncpa [#allocation8], 0 }
   0xe   :  { %30 = vsyncpa [#allocation8 + $0x1], 0  ;;  %s2257_s29 = smov 0   ;;  %s2259_s0 = smov 0  }
   0xf   :  { %s2261_s30 = smov 0   ;;  %s2263_s1 = smov 0  }
  0x10   :  { %s2265_s7 = smov 0   ;;  %s2267_s8 = smov 0  }
  0x11   :  { %s2269_s9 = smov 0   ;;  %s2271_s10 = smov 0  }
  0x12   :  { %s2273_s11 = smov 0  }
  0x13 LB: > { %2915 = sst [smem:[#allocation19_spill]] %s2171_s29  ;;  %s1717_s12 = sadd.s32 4294967295, %s2203_s11   ;;  %s2203_s11 = sphi %s2273_s11, %s36_s11   ;;  %s2199_s10 = sphi %s2271_s10, %s2944_s10   ;;  %s2195_s9 = sphi %s2269_s9, %s2943_s9   ;;  %s2191_s8 = sphi %s2267_s8, %s2949_s8   ;;  %s2187_s7 = sphi %s2265_s7, %s2948_s7   ;;  %s2183_s1 = sphi %s2263_s1, %s2947_s1   ;;  %s2179_s30 = sphi %s2261_s30, %s2942_s30   ;;  %s2175_s0 = sphi %s2259_s0, %s2946_s0   ;;  %s2171_s29 = sphi %s2257_s29, %s2945_s29  }
  0x14   : > { %2916 = sst [smem:[#allocation20_spill]] %s2179_s30  ;;  %p80_p0 = scmp.ne.s32.totalorder %s2191_s8, %s2187_s7 }
  0x15   : > { %2917 = sst [smem:[#allocation21_spill]] %s2199_s10  ;;  %p81_p1 = scmp.eq.s32.totalorder %s2203_s11, 0 }
  0x16   : > { %2918 = sst [smem:[#allocation22_spill]] %s2203_s11  ;;  %p86_p2 = scmp.ne.s32.totalorder %s2187_s7, %s2183_s1 }
  0x17   : > { %s1718_s13 = sadd.s32 4294967294, %s2203_s11   ;;  %p2306_p3 = scmp.eq.s32.totalorder %s1717_s12, 0 }
  0x18   : > { %p2310_p4 = por %p81_p1, %p80_p0  ;;  %p193_p5 = scmp.ne.s32.totalorder %s2179_s30, %s2175_s0 }
  0x19   : > { %p2318_p6 = por %p2306_p3, %p86_p2  ;;  %p194_p7 = scmp.eq.s32.totalorder %s1717_s12, 1 }
  0x1a   : > { %p199_p8 = scmp.ne.s32.totalorder %s2175_s0, %s2171_s29  ;;  %p200_p9 = scmp.eq.s32.totalorder %s1718_s13, 1 }
  0x1b   : > { %p2324_p10 = por %p194_p7, %p193_p5  ;;  %p1723_p11 = scmp.ge.s32.totalorder %s2203_s11, 1 }
  0x1c   : > { %p2329_p12 = por %p200_p9, %p199_p8  ;;  %p207_p13 = scmp.lt.s32.totalorder %s2203_s11, 3 }
  0x1d   : > { %s2922_s17 = scalar_select %p2324_p10, 1, 0 }
  0x1e   : > { %s2924_s18 = scalar_select %p2329_p12, 1, 0 }
  0x1f   : > { %2923 = sst [smem:[#allocation23_spill]] %s2922_s17  ;;  %p2337_p0 = pnand %p1723_p11, %p207_p13 }
  0x20   : > { %2925 = sst [smem:[#allocation24_spill]] %s2924_s18  ;;  %s2207_s23 = smov [#allocation9]  }
  0x21   : > { %s2926_s4 = sld [smem:[#allocation28_spill]]  ;;  %p1861_p2 = pneg %p2337_p0 }
  0x22   : > { %s221_s24 = sshll.u32 %s2207_s23, 4  ;;  %p1880_p5 = scmp.lt.s32.totalorder %s2203_s11, 2  ;;  %s222_s24 = int_to_ptr.vmem [resolvable:$true] %s221_s24 }
  0x23   : > { %p1862_p7 = pnand %p1861_p2, %p2306_p3  ;;  %s2928_s5 = sld [smem:[#allocation29_spill]] }
  0x24   : > { %s1851_s28 = scalar_select %p2310_p4, [#allocation4], [#allocation13] }
  0x25   : > { %p2356_p8 = pnand %p1880_p5, %p2310_p4  ;;  %s2208_s12 = smov [#allocation11]  }
  0x26   : > { %s232_s13 = sshll.u32 %s2208_s12, 4  ;;  %s2901_s19 = smov 128   ;;  %s233_s13 = int_to_ptr.vmem [resolvable:$true] %s232_s13 }
  0x27   : > { %s219_s21 = sshll.u32 %s2926_s4, 4  ;;  %s2902_s20 = smov 8   ;;  %s220_s21 = int_to_ptr.hbm [resolvable:$true] %s219_s21 }
  0x28   : > { %1864 = dma.hbm_to_vmem [thread:$0]  (!%p1862_p7), %s220_s21, 128, %s222_s24, [#allocation10]  }
  0x29   : > { %s230_s27 = sshll.u32 %s2928_s5, 4  ;;  %s48_s23 = sadd.s32 1, %s2199_s10  ;;  %s231_s27 = int_to_ptr.hbm [resolvable:$true] %s230_s27 }
  0x2a   : > { %1867 = dma.hbm_to_vmem [thread:$0]  (!%p1862_p7), %s231_s27, 2048, %s233_s13, [#allocation10], %s2901_s19, %s2901_s19, %s2902_s20  }
  0x2b   : > { %p50_p9 = scmp.ge.s32.totalorder %s48_s23, 2  ;;  %s183_s25 = sadd.s32 1, %s2179_s30 }
  0x2c   : > { %s1719_s21 = sshll.u32 %s2199_s10, 7  ;;  %s246_s26 = sand.u32 1, %s2191_s8  }
  0x2d   : > { %s2951_s23 = smov (%p50_p9, %s48_s23), 0  ;;  %s59_s24 = sld [smem:[#allocation4 + %s1719_s21]] }
  0x2e   : > { %2930 = sst [smem:[#allocation25_spill]] %s2951_s23  ;;  %s1720_s12 = sshll.u32 %s2951_s23, 7 }
  0x2f   : > { %s68_s4 = ssub.s32 %s2199_s10, %s2951_s23  ;;  %s67_s5 = sld [smem:[#allocation4 + %s1720_s12]] }
  0x30   : > { %p181_p11 = scmp.eq.s32.totalorder %s68_s4, 0  ;;  %s2953_s28 = smov (!%p1880_p5, %s1851_s28), [#allocation14] }
  0x31   : > { %s1852_s18 = scalar_select %p2310_p4, %s1719_s21, 0 }
  0x32   : > { %s2375_s29 = scalar_select %p181_p11, %s2179_s30, %s183_s25  }
  0x33   : > { %s2955_s18 = smov (!%p1880_p5, %s1852_s18), 0  ;;  %s1727_s27 = sshll.u32 %s246_s26, 8 }
  0x34   : > { %2931 = sst [smem:[#allocation26_spill]] %s2375_s29  ;;  %s73_s20 = sadd.s32 1, %s2191_s8 }
  0x35   : > { %s69_s13 = ssub.s32 %s59_s24, %s67_s5  ;;  %s258_s19 = sld [smem:[%s2953_s28 + %s2955_s18]] }
  0x36   : > { %s70_s17 = sor.u32 %s69_s13, %s68_s4  ;;  %s250_s12 = scalar_lea.vmem [#allocation6], %s1727_s27 }
  0x37   : > { %p71_p13 = scmp.eq.s32.totalorder %s70_s17, 0  ;;  %s269_s10 = sshll.u32 %s250_s12, 4  ;;  %s270_s10 = int_to_ptr.vmem [resolvable:$true] %s269_s10 }
  0x38   : > { %s247_s5 = scalar_lea.sflag [#allocation7], %s246_s26  ;;  %p2065_p2 = pneg %p2356_p8 }
  0x39   : > { %s2383_s6 = scalar_select %p71_p13, %s2191_s8, %s73_s20  }
  0x3b   : > { %s1730_s23 = sshll.u32 %s258_s19, 1  ;;  %s2068_s19 = scalar_lea.hbm %s2893_s2, 1024 }
  0x3c   : > { %s264_s15 = sadd.s32 %s1730_s23, %s1719_s21 }
  0x3d   : > { %s1732_s3 = sshll.u32 %s264_s15, 2 }
  0x3e   : > { %s266_s30 = scalar_lea.hbm %s2893_s2, %s1732_s3 }
  0x3f   : > { %s267_s11 = sshll.u32 %s266_s30, 4  ;;  %s268_s11 = int_to_ptr.hbm [resolvable:$true] %s267_s11 }
  0x40   : > { %s2061_s18 = sshra.s32 %s268_s11, 4  ;;  %s2062_s18 = int_to_ptr.hbm [resolvable:$true] %s2061_s18 }
  0x41   : > { %s2063_s4 = scalar_lea.hbm %s2062_s18, 256  ;;  %p2069_p9 = scmp.lt.s32.totalorder %s2062_s18, %s2893_s2 }
  0x42   : > { %p2064_p4 = scmp.ne.s32.totalorder %s2062_s18, %s2063_s4  ;;  %p2070_p11 = scmp.lt.s32.totalorder %s2068_s19, %s2063_s4 }
  0x44   : > { %p2066_p5 = pnand %p2065_p2, %p2064_p4  ;;  %p2071_p13 = por %p2070_p11, %p2069_p9 }
  0x46   : > { %p2067_p7 = pneg %p2066_p5 }
  0x48   : > { %p2072_p1 = pnand %p2071_p13, %p2067_p7 }
  0x4a   : > { %2075 = shalt.err (!%p2072_p1)
}
  0x4b   : > { %s2211_s3 = smov 256   ;;  %s2932_s29 = smov 8  }
  0x4c   : > { %s2933_s30 = smov 128   ;;  %305 = sbr.rel (%p2337_p0) target bundleno = 725 (0x2d5), region = 36 }
  0x4d   : > { %1873 = dma.hbm_to_vmem [thread:$0]  (!%p2356_p8), %s268_s11, 4096, %s270_s10, %s247_s5, %s2211_s3, %s2933_s30, %s2932_s29  }
  0x4e   : > { %s307_s21 = sand.u32 (!%p2337_p0), 1, %s2187_s7  }
  0x4f   : > { %s1734_s24 = sshll.u32 (!%p2337_p0), %s307_s21, 8  ;;  %s308_s26 = scalar_lea.sflag (!%p2337_p0), [#allocation7], %s307_s21 }
  0x50   : > { %s2403_s27 = scalar_lea.vmem (!%p2337_p0), [#allocation6], %s1734_s24 }
  0x51   : > { %2158 = dma.done.wait (%p2318_p6), %s308_s26, 4096  }
  0x52   : > { %2160 = vsyncadd (%p2318_p6), %s308_s26, 4294963200 }
  0x53   : > { %2162 = dma.done.wait (%p2306_p3), [#allocation10], 2176  }
  0x54   : > { %2164 = vsyncadd (%p2306_p3), [#allocation10], 4294965120  ;;  %s1738_s10 = sshll.u32 %s2195_s9, 7  ;;  %s356_s11 = sand.u32 1, %s2175_s0   ;;  %vm395_vm0 = vcmask 7168   ;;  %v2212_v0 = vmov 0.0  }
  0x55   : > { %s376_s22 = sld [smem:[#allocation4 + %s1738_s10]]  ;;  %s2417_s1 = sshll.u32 %s356_s11, 8  ;;  %396 = vst.msk [vmem:[#allocation2] sm:$0xff] %vm395_vm0, %v2212_v0 }
  0x56   : > { %s2421_s16 = sld [smem:[#allocation5 + %s2195_s9]]  ;;  %397 = vst.msk [vmem:[#allocation2 + $0x8] sm:$0xff] %vm395_vm0, %v2212_v0  ;;  %s2461_s5 = scalar_lea.vmem [#allocation12], %s2417_s1 }
  0x57   : > { %398 = vst.msk [vmem:[#allocation2 + $0x10] sm:$0xff] %vm395_vm0, %v2212_v0  ;;  %s2934_s15 = sld [smem:[#allocation27_spill]] }
  0x58   : > { %399 = vst.msk [vmem:[#allocation2 + $0x18] sm:$0xff] %vm395_vm0, %v2212_v0 }
  0x59   : > { %400 = vst.msk [vmem:[#allocation2 + $0x20] sm:$0xff] %vm395_vm0, %v2212_v0 }
  0x5a   : > { %401 = vst.msk [vmem:[#allocation2 + $0x28] sm:$0xff] %vm395_vm0, %v2212_v0 }
  0x5b   : > { %s1739_s14 = sshll.u32 %s376_s22, 1  ;;  %402 = vst.msk [vmem:[#allocation2 + $0x30] sm:$0xff] %vm395_vm0, %v2212_v0 }
  0x5c   : > { %p378_p3 = scmp.lt.s32.totalorder %s1739_s14, 3  ;;  %403 = vst.msk [vmem:[#allocation2 + $0x38] sm:$0xff] %vm395_vm0, %v2212_v0  ;;  %p1741_p6 = scmp.le.s32.totalorder %s2421_s16, 0 }
  0x5d   : > { %404 = vst.msk [vmem:[#allocation2 + $0x40] sm:$0xff] %vm395_vm0, %v2212_v0 }
  0x5e   : > { %s2957_s14 = smov (!%p378_p3, %s1739_s14), 3  ;;  %405 = vst.msk [vmem:[#allocation2 + $0x48] sm:$0xff] %vm395_vm0, %v2212_v0 }
  0x5f   : > { %406 = vst.msk [vmem:[#allocation2 + $0x50] sm:$0xff] %vm395_vm0, %v2212_v0  ;;  %s380_s25 = scalar_lea.vmem %s2934_s15, %s2957_s14 }
  0x60   : > { %407 = vst.msk [vmem:[#allocation2 + $0x58] sm:$0xff] %vm395_vm0, %v2212_v0 }
  0x61   : > { %408 = vst.msk [vmem:[#allocation2 + $0x60] sm:$0xff] %vm395_vm0, %v2212_v0 }
  0x62   : > { %409 = vst.msk [vmem:[#allocation2 + $0x68] sm:$0xff] %vm395_vm0, %v2212_v0 }
  0x63   : > { %410 = vst.msk [vmem:[#allocation2 + $0x70] sm:$0xff] %vm395_vm0, %v2212_v0 }
  0x64   : > { %411 = vst.msk [vmem:[#allocation2 + $0x78] sm:$0xff] %vm395_vm0, %v2212_v0 }
  0x65   : > { %412 = vst.msk [vmem:[#allocation2 + $0x80] sm:$0xff] %vm395_vm0, %v2212_v0 }
  0x66   : > { %413 = vst.msk [vmem:[#allocation2 + $0x88] sm:$0xff] %vm395_vm0, %v2212_v0 }
  0x67   : > { %414 = vst.msk [vmem:[#allocation2 + $0x90] sm:$0xff] %vm395_vm0, %v2212_v0 }
  0x68   : > { %415 = vst.msk [vmem:[#allocation2 + $0x98] sm:$0xff] %vm395_vm0, %v2212_v0 }
  0x69   : > { %416 = vst.msk [vmem:[#allocation2 + $0xa0] sm:$0xff] %vm395_vm0, %v2212_v0 }
  0x6a   : > { %417 = vst.msk [vmem:[#allocation2 + $0xa8] sm:$0xff] %vm395_vm0, %v2212_v0 }
  0x6b   : > { %418 = vst.msk [vmem:[#allocation2 + $0xb0] sm:$0xff] %vm395_vm0, %v2212_v0 }
  0x6c   : > { %419 = vst.msk [vmem:[#allocation2 + $0xb8] sm:$0xff] %vm395_vm0, %v2212_v0 }
  0x6d   : > { %420 = vst.msk [vmem:[#allocation2 + $0xc0] sm:$0xff] %vm395_vm0, %v2212_v0 }
  0x6e   : > { %421 = vst.msk [vmem:[#allocation2 + $0xc8] sm:$0xff] %vm395_vm0, %v2212_v0 }
  0x6f   : > { %422 = vst.msk [vmem:[#allocation2 + $0xd0] sm:$0xff] %vm395_vm0, %v2212_v0 }
  0x70   : > { %423 = vst.msk [vmem:[#allocation2 + $0xd8] sm:$0xff] %vm395_vm0, %v2212_v0  ;;  %432 = sbr.rel (%p1741_p6) target bundleno = 324 (0x144), region = 56 }
  0x71   : > { %424 = vst.msk [vmem:[#allocation2 + $0xe0] sm:$0xff] %vm395_vm0, %v2212_v0 }
  0x72   : > { %425 = vst.msk [vmem:[#allocation2 + $0xe8] sm:$0xff] %vm395_vm0, %v2212_v0 }
  0x73   : > { %426 = vst.msk [vmem:[#allocation2 + $0xf0] sm:$0xff] %vm395_vm0, %v2212_v0 }
  0x74   : > { %427 = vst.msk [vmem:[#allocation2 + $0xf8] sm:$0xff] %vm395_vm0, %v2212_v0 }
  0x75   : > { %v467_v1 = vld [vmem:[%s2403_s27 + $0x10] sm:$0xff]  ;;  %v497_v2 = vld [vmem:[%s380_s25] sm:$0x3]  ;;  %v468_v9 = vld [vmem:[%s2403_s27 + $0x18] sm:$0xff] }
  0x76   : > { %v465_v3 = vld [vmem:[%s2403_s27] sm:$0xff]  ;;  %v502_v4 = vunpack.c.l.bf16 %v467_v1  ;;  %v503_v5 = vunpack.c.h.bf16 %v467_v1  ;;  %v2466_v6 = vperm.slane %v497_v2, 0  ;;  %v2468_v7 = vperm.slane %v497_v2, 1  ;;  %v466_v14 = vld [vmem:[%s2403_s27 + $0x8] sm:$0xff]  ;;  %v472_v36 = vld [vmem:[%s2403_s27 + $0x38] sm:$0xff] }
  0x77   : > { %v469_v8 = vld [vmem:[%s2403_s27 + $0x20] sm:$0xff]  ;;  %v498_v10 = vunpack.c.l.bf16 %v465_v3  ;;  %v499_v11 = vunpack.c.h.bf16 %v465_v3  ;;  %v504_v17 = vunpack.c.l.bf16 %v468_v9  ;;  %v505_v18 = vunpack.c.h.bf16 %v468_v9  ;;  %v470_v19 = vld [vmem:[%s2403_s27 + $0x28] sm:$0xff]  ;;  %v471_v37 = vld [vmem:[%s2403_s27 + $0x30] sm:$0xff] }
  0x78   : > { %v506_v12 = vunpack.c.l.bf16 %v469_v8  ;;  %v507_v13 = vunpack.c.h.bf16 %v469_v8  ;;  %v571_v15 = vmul.f32 %v2466_v6, %v502_v4  ;;  %v572_v16 = vmul.f32 %v2468_v7, %v503_v5  ;;  %v473_v39 = vld [vmem:[%s2403_s27 + $0x40] sm:$0xff]  ;;  %v475_v52 = vld [vmem:[%s2403_s27 + $0x50] sm:$0xff]  ;;  %v474_v56 = vld [vmem:[%s2403_s27 + $0x48] sm:$0xff] }
  0x79   : > { %v567_v20 = vmul.f32 %v2466_v6, %v498_v10  ;;  %v568_v21 = vmul.f32 %v2468_v7, %v499_v11  ;;  %v573_v25 = vmul.f32 %v2466_v6, %v504_v17  ;;  %v574_v26 = vmul.f32 %v2468_v7, %v505_v18  ;;  %v476_v57 = vld [vmem:[%s2403_s27 + $0x58] sm:$0xff]  ;;  %v478_v3 = vld [vmem:[%s2403_s27 + $0x68] sm:$0xff]  ;;  %v477_v4 = vld [vmem:[%s2403_s27 + $0x60] sm:$0xff] }
  0x7a   : > { %v575_v22 = vmul.f32 %v2466_v6, %v506_v12  ;;  %v576_v23 = vmul.f32 %v2468_v7, %v507_v13  ;;  %v637_v24 = vadd.f32 %v572_v16, %v571_v15  ;;  %v500_v27 = vunpack.c.l.bf16 %v466_v14  ;;  %v479_v9 = vld [vmem:[%s2403_s27 + $0x70] sm:$0xff] }
  0x7b   : > { %v631_v28 = vadd.f32 %v568_v21, %v567_v20  ;;  %v501_v30 = vunpack.c.h.bf16 %v466_v14  ;;  %v508_v31 = vunpack.c.l.bf16 %v470_v19  ;;  %v509_v32 = vunpack.c.h.bf16 %v470_v19  ;;  %v481_v20 = vld [vmem:[%s2403_s27 + $0x80] sm:$0xff] }
  0x7c   : > { %v643_v29 = vadd.f32 %v576_v23, %v575_v22  ;;  %638 = vadd.xlane.f32.xlu1 %v637_v24  ;;  %v569_v33 = vmul.f32 %v2466_v6, %v500_v27  ;;  %v640_v40 = vadd.f32 %v574_v26, %v573_v25  ;;  %v512_v41 = vunpack.c.l.bf16 %v472_v36  ;;  %v480_v25 = vld [vmem:[%s2403_s27 + $0x78] sm:$0xff] }
  0x7d   : > { %632 = vadd.xlane.f32.xlu0 %v631_v28  ;;  %v570_v34 = vmul.f32 %v2468_v7, %v501_v30  ;;  %v577_v35 = vmul.f32 %v2466_v6, %v508_v31  ;;  %v578_v38 = vmul.f32 %v2468_v7, %v509_v32  ;;  %v513_v42 = vunpack.c.h.bf16 %v472_v36  ;;  %v482_v30 = vld [vmem:[%s2403_s27 + $0x88] sm:$0xff] }
  0x7e   : > { %644 = vadd.xlane.f32.xlu2 %v643_v29  ;;  %v510_v43 = vunpack.c.l.bf16 %v471_v37  ;;  %v511_v44 = vunpack.c.h.bf16 %v471_v37  ;;  %v514_v47 = vunpack.c.l.bf16 %v473_v39  ;;  %v515_v48 = vunpack.c.h.bf16 %v473_v39 }
  0x7f   : > { %v634_v45 = vadd.f32 %v570_v34, %v569_v33  ;;  %v646_v46 = vadd.f32 %v578_v38, %v577_v35  ;;  %v581_v49 = vmul.f32 %v2466_v6, %v512_v41  ;;  %v582_v50 = vmul.f32 %v2468_v7, %v513_v42  ;;  %v484_v41 = vld [vmem:[%s2403_s27 + $0x98] sm:$0xff]  ;;  %v490_v42 = vld [vmem:[%s2403_s27 + $0xc8] sm:$0xff] }
  0x80   : > { %v579_v51 = vmul.f32 %v2466_v6, %v510_v43  ;;  %v580_v53 = vmul.f32 %v2468_v7, %v511_v44  ;;  %v583_v54 = vmul.f32 %v2466_v6, %v514_v47  ;;  %v584_v55 = vmul.f32 %v2468_v7, %v515_v48  ;;  %v489_v47 = vld [vmem:[%s2403_s27 + $0xc0] sm:$0xff] }
  0x81   : > { %v518_v58 = vunpack.c.l.bf16 %v475_v52  ;;  %v519_v59 = vunpack.c.h.bf16 %v475_v52  ;;  %v652_v60 = vadd.f32 %v582_v50, %v581_v49  ;;  %v516_v61 = vunpack.c.l.bf16 %v474_v56 }
  0x82   : > { %v517_v62 = vunpack.c.h.bf16 %v474_v56  ;;  %v649_v63 = vadd.f32 %v580_v53, %v579_v51  ;;  %v655_v0 = vadd.f32 %v584_v55, %v583_v54  ;;  %v520_v1 = vunpack.c.l.bf16 %v476_v57 }
  0x83   : > { %v521_v2 = vunpack.c.h.bf16 %v476_v57  ;;  %v587_v5 = vmul.f32 %v2466_v6, %v518_v58  ;;  %v588_v8 = vmul.f32 %v2468_v7, %v519_v59  ;;  %v585_v10 = vmul.f32 %v2466_v6, %v516_v61 }
  0x84   : > { %641 = vadd.xlane.f32.xlu1 %v640_v40  ;;  %v586_v11 = vmul.f32 %v2468_v7, %v517_v62  ;;  %v524_v12 = vunpack.c.l.bf16 %v478_v3  ;;  %v525_v13 = vunpack.c.h.bf16 %v478_v3  ;;  %v589_v14 = vmul.f32 %v2466_v6, %v520_v1 }
  0x85   : > { %635 = vadd.xlane.f32.xlu0 %v634_v45  ;;  %v590_v15 = vmul.f32 %v2468_v7, %v521_v2  ;;  %v522_v16 = vunpack.c.l.bf16 %v477_v4  ;;  %v523_v17 = vunpack.c.h.bf16 %v477_v4  ;;  %v526_v18 = vunpack.c.l.bf16 %v479_v9  ;;  %v485_v2 = vld [vmem:[%s2403_s27 + $0xa0] sm:$0xff] }
  0x86   : > { %647 = vadd.xlane.f32.xlu2 %v646_v46  ;;  %v527_v19 = vunpack.c.h.bf16 %v479_v9  ;;  %v661_v21 = vadd.f32 %v588_v8, %v587_v5  ;;  %v658_v22 = vadd.f32 %v586_v11, %v585_v10  ;;  %v593_v23 = vmul.f32 %v2466_v6, %v524_v12  ;;  %v491_v9 = vld [vmem:[%s2403_s27 + $0xd0] sm:$0xff]  ;;  %v493_v10 = vld [vmem:[%s2403_s27 + $0xe0] sm:$0xff] }
  0x87   : > { %v594_v24 = vmul.f32 %v2468_v7, %v525_v13  ;;  %v664_v26 = vadd.f32 %v590_v15, %v589_v14  ;;  %v591_v27 = vmul.f32 %v2466_v6, %v522_v16  ;;  %v592_v28 = vmul.f32 %v2468_v7, %v523_v17  ;;  %v492_v15 = vld [vmem:[%s2403_s27 + $0xd8] sm:$0xff] }
  0x88   : > { %v530_v29 = vunpack.c.l.bf16 %v481_v20  ;;  %v595_v31 = vmul.f32 %v2466_v6, %v526_v18  ;;  %v596_v32 = vmul.f32 %v2468_v7, %v527_v19  ;;  %v531_v33 = vunpack.c.h.bf16 %v481_v20 }
  0x89   : > { %v528_v34 = vunpack.c.l.bf16 %v480_v25  ;;  %v529_v35 = vunpack.c.h.bf16 %v480_v25  ;;  %v532_v36 = vunpack.c.l.bf16 %v482_v30  ;;  %v670_v37 = vadd.f32 %v594_v24, %v593_v23 }
  0x8a   : > { %v667_v38 = vadd.f32 %v592_v28, %v591_v27  ;;  %v599_v39 = vmul.f32 %v2466_v6, %v530_v29  ;;  %v533_v40 = vunpack.c.h.bf16 %v482_v30  ;;  %v673_v43 = vadd.f32 %v596_v32, %v595_v31  ;;  %v486_v29 = vld [vmem:[%s2403_s27 + $0xa8] sm:$0xff] }
  0x8b   : > { %v600_v44 = vmul.f32 %v2468_v7, %v531_v33  ;;  %v548_v45 = vunpack.c.l.bf16 %v490_v42  ;;  %v549_v46 = vunpack.c.h.bf16 %v490_v42  ;;  %v597_v48 = vmul.f32 %v2466_v6, %v528_v34  ;;  %v488_v42 = vld [vmem:[%s2403_s27 + $0xb8] sm:$0xff] }
  0x8c   : > { %653 = vadd.xlane.f32.xlu1 %v652_v60  ;;  %v598_v49 = vmul.f32 %v2468_v7, %v529_v35  ;;  %v546_v50 = vunpack.c.l.bf16 %v489_v47  ;;  %v547_v51 = vunpack.c.h.bf16 %v489_v47  ;;  %v601_v52 = vmul.f32 %v2466_v6, %v532_v36  ;;  %v483_v60 = vld [vmem:[%s2403_s27 + $0x90] sm:$0xff] }
  0x8d   : > { %650 = vadd.xlane.f32.xlu0 %v649_v63  ;;  %v536_v53 = vunpack.c.l.bf16 %v484_v41  ;;  %v617_v54 = vmul.f32 %v2466_v6, %v548_v45  ;;  %v618_v55 = vmul.f32 %v2468_v7, %v549_v46  ;;  %v602_v56 = vmul.f32 %v2468_v7, %v533_v40  ;;  %v494_v40 = vld [vmem:[%s2403_s27 + $0xe8] sm:$0xff]  ;;  %v495_v47 = vld [vmem:[%s2403_s27 + $0xf0] sm:$0xff] }
  0x8e   : > { %656 = vadd.xlane.f32.xlu2 %v655_v0  ;;  %v537_v57 = vunpack.c.h.bf16 %v484_v41  ;;  %v615_v58 = vmul.f32 %v2466_v6, %v546_v50  ;;  %v616_v59 = vmul.f32 %v2468_v7, %v547_v51  ;;  %v679_v63 = vadd.f32 %v600_v44, %v599_v39  ;;  %v496_v41 = vld [vmem:[%s2403_s27 + $0xf8] sm:$0xff] }
  0x8f   : > { %v2530_v61 = vadd.f32 %v618_v55, %v617_v54  ;;  %v676_v0 = vadd.f32 %v598_v49, %v597_v48  ;;  %v605_v1 = vmul.f32 %v2466_v6, %v536_v53  ;;  %v682_v3 = vadd.f32 %v602_v56, %v601_v52 }
  0x90   : > { %v2532_v62 = vadd.f32 %v616_v59, %v615_v58  ;;  %v606_v4 = vmul.f32 %v2468_v7, %v537_v57  ;;  %v534_v5 = vunpack.c.l.bf16 %v483_v60  ;;  %v535_v8 = vunpack.c.h.bf16 %v483_v60 }
  0x91   : > { %v550_v11 = vunpack.c.l.bf16 %v491_v9  ;;  %v551_v12 = vunpack.c.h.bf16 %v491_v9  ;;  %v554_v13 = vunpack.c.l.bf16 %v493_v10  ;;  %v555_v14 = vunpack.c.h.bf16 %v493_v10 }
  0x92   : > { %v538_v16 = vunpack.c.l.bf16 %v485_v2  ;;  %v539_v17 = vunpack.c.h.bf16 %v485_v2  ;;  %v552_v18 = vunpack.c.l.bf16 %v492_v15  ;;  %v553_v19 = vunpack.c.h.bf16 %v492_v15 }
  0x93   : > { %v619_v20 = vmul.f32 %v2466_v6, %v550_v11  ;;  %v624_v23 = vmul.f32 %v2468_v7, %v555_v14  ;;  %v603_v24 = vmul.f32 %v2466_v6, %v534_v5  ;;  %v604_v25 = vmul.f32 %v2468_v7, %v535_v8 }
  0x94   : > { %662 = vadd.xlane.f32.xlu1 %v661_v21  ;;  %v620_v21 = vmul.f32 %v2468_v7, %v551_v12  ;;  %v621_v27 = vmul.f32 %v2466_v6, %v552_v18  ;;  %v622_v28 = vmul.f32 %v2468_v7, %v553_v19  ;;  %v607_v32 = vmul.f32 %v2466_v6, %v538_v16  ;;  %v435_v12 = vld [vmem:[#allocation2 + $0x10] sm:$0xff]  ;;  %v438_v19 = vld [vmem:[#allocation2 + $0x28] sm:$0xff] }
  0x95   : > { %659 = vadd.xlane.f32.xlu0 %v658_v22  ;;  %v623_v22 = vmul.f32 %v2466_v6, %v554_v13  ;;  %v608_v33 = vmul.f32 %v2468_v7, %v539_v17  ;;  %v688_v36 = vadd.f32 %v606_v4, %v605_v1  ;;  %v540_v39 = vunpack.c.l.bf16 %v486_v29  ;;  %v437_v13 = vld [vmem:[#allocation2 + $0x20] sm:$0xff] }
  0x96   : > { %665 = vadd.xlane.f32.xlu2 %v664_v26  ;;  %v487_v26 = vld [vmem:[%s2403_s27 + $0xb0] sm:$0xff]  ;;  %v709_v30 = vadd.f32 %v620_v21, %v619_v20  ;;  %v712_v34 = vadd.f32 %v622_v28, %v621_v27  ;;  %v557_v44 = vunpack.c.h.bf16 %v494_v40  ;;  %v560_v45 = vunpack.c.l.bf16 %v496_v41  ;;  %v441_v28 = vld [vmem:[#allocation2 + $0x40] sm:$0xff] }
  0x97   : > { %v715_v31 = vadd.f32 %v624_v23, %v623_v22  ;;  %v542_v35 = vunpack.c.l.bf16 %v487_v26  ;;  %v561_v46 = vunpack.c.h.bf16 %v496_v41  ;;  %v691_v48 = vadd.f32 %v608_v33, %v607_v32  ;;  %v439_v27 = vld [vmem:[#allocation2 + $0x30] sm:$0xff] }
  0x98   : > { %v541_v49 = vunpack.c.h.bf16 %v486_v29  ;;  %v558_v50 = vunpack.c.l.bf16 %v495_v47  ;;  %v559_v51 = vunpack.c.h.bf16 %v495_v47  ;;  %v626_v53 = vmul.f32 %v2468_v7, %v557_v44  ;;  %v446_v44 = vld [vmem:[#allocation2 + $0x68] sm:$0xff] }
  0x99   : > { %v629_v54 = vmul.f32 %v2466_v6, %v560_v45  ;;  %v630_v55 = vmul.f32 %v2468_v7, %v561_v46  ;;  %v544_v56 = vunpack.c.l.bf16 %v488_v42  ;;  %v545_v57 = vunpack.c.h.bf16 %v488_v42  ;;  %v445_v45 = vld [vmem:[#allocation2 + $0x60] sm:$0xff]  ;;  %v447_v46 = vld [vmem:[#allocation2 + $0x70] sm:$0xff] }
  0x9a   : > { %v627_v58 = vmul.f32 %v2466_v6, %v558_v50  ;;  %v628_v59 = vmul.f32 %v2468_v7, %v559_v51  ;;  %v611_v1 = vmul.f32 %v2466_v6, %v542_v35  ;;  %v610_v4 = vmul.f32 %v2468_v7, %v541_v49  ;;  %v443_v35 = vld [vmem:[#allocation2 + $0x50] sm:$0xff] }
  0x9b   : > { %v613_v5 = vmul.f32 %v2466_v6, %v544_v56  ;;  %v614_v8 = vmul.f32 %v2468_v7, %v545_v57 }
  0x9c   : > { %671 = vadd.xlane.f32.xlu1 %v670_v37  ;;  %v685_v37 = vadd.f32 %v604_v25, %v603_v24 }
  0x9d   : > { %668 = vadd.xlane.f32.xlu0 %v667_v38  ;;  %v543_v38 = vunpack.c.h.bf16 %v487_v26  ;;  %v700_v11 = vadd.f32 %v614_v8, %v613_v5  ;;  %v440_v26 = vld [vmem:[#allocation2 + $0x38] sm:$0xff] }
  0x9e   : > { %674 = vadd.xlane.f32.xlu2 %v673_v43  ;;  %v556_v43 = vunpack.c.l.bf16 %v494_v40 }
  0x9f   : > { %v612_v2 = vmul.f32 %v2468_v7, %v543_v38 }
  0xa0   : > { %v625_v52 = vmul.f32 %v2466_v6, %v556_v43 }
  0xa1   : > { %v697_v9 = vadd.f32 %v612_v2, %v611_v1  ;;  %v451_v1 = vld [vmem:[#allocation2 + $0x90] sm:$0xff]  ;;  %v453_v2 = vld [vmem:[#allocation2 + $0xa0] sm:$0xff] }
  0xa2   : > { %v718_v60 = vadd.f32 %v626_v53, %v625_v52  ;;  %v449_v53 = vld [vmem:[#allocation2 + $0x80] sm:$0xff] }
  0xa4   : > { %680 = vadd.xlane.f32.xlu1 %v679_v63  ;;  %v724_v63 = vadd.f32 %v630_v55, %v629_v54  ;;  %v448_v54 = vld [vmem:[#allocation2 + $0x78] sm:$0xff]  ;;  %v450_v55 = vld [vmem:[#allocation2 + $0x88] sm:$0xff] }
  0xa5   : > { %677 = vadd.xlane.f32.xlu0 %v676_v0  ;;  %v721_v0 = vadd.f32 %v628_v59, %v627_v58 }
  0xa6   : > { %683 = vadd.xlane.f32.xlu2 %v682_v3  ;;  %v609_v3 = vmul.f32 %v2466_v6, %v540_v39  ;;  %v433_v6 = vld [vmem:[#allocation2] sm:$0xff] }
  0xa8   : > { %v694_v10 = vadd.f32 %v610_v4, %v609_v3 }
  0xac   : > { %689 = vadd.xlane.f32.xlu1 %v688_v36  ;;  %v442_v36 = vld [vmem:[#allocation2 + $0x48] sm:$0xff] }
  0xad   : > { %686 = vadd.xlane.f32.xlu0 %v685_v37  ;;  %v444_v37 = vld [vmem:[#allocation2 + $0x58] sm:$0xff] }
  0xae   : > { %692 = vadd.xlane.f32.xlu2 %v691_v48 }
  0xb4   : > { %698 = vadd.xlane.f32.xlu1 %v697_v9 }
  0xb5   : > { %695 = vadd.xlane.f32.xlu0 %v694_v10 }
  0xb6   : > { %701 = vadd.xlane.f32.xlu2 %v700_v11  ;;  %v455_v11 = vld [vmem:[#allocation2 + $0xb0] sm:$0xff] }
  0xbc   : > { %707 = vadd.xlane.f32.xlu1 %v2530_v61  ;;  %v436_v61 = vld [vmem:[#allocation2 + $0x18] sm:$0xff] }
  0xbd   : > { %704 = vadd.xlane.f32.xlu0 %v2532_v62  ;;  %v434_v62 = vld [vmem:[#allocation2 + $0x8] sm:$0xff] }
  0xbe   : > { %710 = vadd.xlane.f32.xlu2 %v709_v30 }
  0xc4   : > { %716 = vadd.xlane.f32.xlu1 %v715_v31 }
  0xc5   : > { %713 = vadd.xlane.f32.xlu0 %v712_v34 }
  0xc6   : > { %719 = vadd.xlane.f32.xlu2 %v718_v60 }
  0xcc   : > { %725 = vadd.xlane.f32.xlu1 %v724_v63 }
  0xcd   : > { %722 = vadd.xlane.f32.xlu0 %v721_v0  ;;  %v452_v0 = vld [vmem:[#allocation2 + $0x98] sm:$0xff] }
  0xef   : > { %v639_v7 = vpop.xlane.xlu1 %638 }
  0xf0   : > { %v729_v14 = vadd.f32 %v639_v7, %v435_v12  ;;  %v633_v15 = vpop.xlane.xlu0 %632  ;;  %v454_v12 = vld [vmem:[#allocation2 + $0xa8] sm:$0xff] }
  0xf1   : > { %v645_v16 = vpop.xlane.xlu2 %644  ;;  %v727_v17 = vadd.f32 %v633_v15, %v433_v6  ;;  %v456_v6 = vld [vmem:[#allocation2 + $0xb8] sm:$0xff] }
  0xf2   : > { %v731_v18 = vadd.f32 %v645_v16, %v437_v13  ;;  %762 = vst.msk [vmem:[#allocation2 + $0x10] sm:$0xff] %vm395_vm0, %v729_v14 }
  0xf3   : > { %760 = vst.msk [vmem:[#allocation2] sm:$0xff] %vm395_vm0, %v727_v17 }
  0xf4   : > { %764 = vst.msk [vmem:[#allocation2 + $0x20] sm:$0xff] %vm395_vm0, %v731_v18  ;;  %v458_v18 = vld [vmem:[#allocation2 + $0xc8] sm:$0xff] }
  0xf7   : > { %v642_v20 = vpop.xlane.xlu1 %641 }
  0xf8   : > { %v730_v21 = vadd.f32 %v642_v20, %v436_v61  ;;  %v636_v22 = vpop.xlane.xlu0 %635  ;;  %v457_v61 = vld [vmem:[#allocation2 + $0xc0] sm:$0xff] }
  0xf9   : > { %v648_v23 = vpop.xlane.xlu2 %647  ;;  %v728_v24 = vadd.f32 %v636_v22, %v434_v62  ;;  %v459_v62 = vld [vmem:[#allocation2 + $0xd0] sm:$0xff] }
  0xfa   : > { %v732_v25 = vadd.f32 %v648_v23, %v438_v19  ;;  %763 = vst.msk [vmem:[#allocation2 + $0x18] sm:$0xff] %vm395_vm0, %v730_v21 }
  0xfb   : > { %761 = vst.msk [vmem:[#allocation2 + $0x8] sm:$0xff] %vm395_vm0, %v728_v24 }
  0xfc   : > { %765 = vst.msk [vmem:[#allocation2 + $0x28] sm:$0xff] %vm395_vm0, %v732_v25  ;;  %v461_v25 = vld [vmem:[#allocation2 + $0xe0] sm:$0xff] }
  0xff   : > { %v654_v29 = vpop.xlane.xlu1 %653 }
 0x100   : > { %v734_v30 = vadd.f32 %v654_v29, %v440_v26  ;;  %v651_v31 = vpop.xlane.xlu0 %650  ;;  %v460_v26 = vld [vmem:[#allocation2 + $0xd8] sm:$0xff] }
 0x101   : > { %v657_v32 = vpop.xlane.xlu2 %656  ;;  %v733_v33 = vadd.f32 %v651_v31, %v439_v27  ;;  %v462_v27 = vld [vmem:[#allocation2 + $0xe8] sm:$0xff] }
 0x102   : > { %v735_v34 = vadd.f32 %v657_v32, %v441_v28  ;;  %767 = vst.msk [vmem:[#allocation2 + $0x38] sm:$0xff] %vm395_vm0, %v734_v30 }
 0x103   : > { %766 = vst.msk [vmem:[#allocation2 + $0x30] sm:$0xff] %vm395_vm0, %v733_v33 }
 0x104   : > { %768 = vst.msk [vmem:[#allocation2 + $0x40] sm:$0xff] %vm395_vm0, %v735_v34  ;;  %v464_v34 = vld [vmem:[#allocation2 + $0xf8] sm:$0xff] }
 0x107   : > { %v663_v38 = vpop.xlane.xlu1 %662 }
 0x108   : > { %v737_v39 = vadd.f32 %v663_v38, %v443_v35  ;;  %v660_v40 = vpop.xlane.xlu0 %659  ;;  %v463_v35 = vld [vmem:[#allocation2 + $0xf0] sm:$0xff] }
 0x109   : > { %v666_v41 = vpop.xlane.xlu2 %665  ;;  %v736_v42 = vadd.f32 %v660_v40, %v442_v36 }
 0x10a   : > { %v738_v43 = vadd.f32 %v666_v41, %v444_v37  ;;  %770 = vst.msk [vmem:[#allocation2 + $0x50] sm:$0xff] %vm395_vm0, %v737_v39 }
 0x10b   : > { %769 = vst.msk [vmem:[#allocation2 + $0x48] sm:$0xff] %vm395_vm0, %v736_v42 }
 0x10c   : > { %771 = vst.msk [vmem:[#allocation2 + $0x58] sm:$0xff] %vm395_vm0, %v738_v43 }
 0x10f   : > { %v672_v47 = vpop.xlane.xlu1 %671 }
 0x110   : > { %v740_v48 = vadd.f32 %v672_v47, %v446_v44  ;;  %v669_v49 = vpop.xlane.xlu0 %668 }
 0x111   : > { %v675_v50 = vpop.xlane.xlu2 %674  ;;  %v739_v51 = vadd.f32 %v669_v49, %v445_v45 }
 0x112   : > { %v741_v52 = vadd.f32 %v675_v50, %v447_v46  ;;  %773 = vst.msk [vmem:[#allocation2 + $0x68] sm:$0xff] %vm395_vm0, %v740_v48 }
 0x113   : > { %772 = vst.msk [vmem:[#allocation2 + $0x60] sm:$0xff] %vm395_vm0, %v739_v51 }
 0x114   : > { %774 = vst.msk [vmem:[#allocation2 + $0x70] sm:$0xff] %vm395_vm0, %v741_v52 }
 0x117   : > { %v681_v56 = vpop.xlane.xlu1 %680 }
 0x118   : > { %v743_v57 = vadd.f32 %v681_v56, %v449_v53  ;;  %v678_v58 = vpop.xlane.xlu0 %677 }
 0x119   : > { %v684_v59 = vpop.xlane.xlu2 %683  ;;  %v742_v60 = vadd.f32 %v678_v58, %v448_v54 }
 0x11a   : > { %v744_v63 = vadd.f32 %v684_v59, %v450_v55  ;;  %776 = vst.msk [vmem:[#allocation2 + $0x80] sm:$0xff] %vm395_vm0, %v743_v57 }
 0x11b   : > { %775 = vst.msk [vmem:[#allocation2 + $0x78] sm:$0xff] %vm395_vm0, %v742_v60 }
 0x11c   : > { %777 = vst.msk [vmem:[#allocation2 + $0x88] sm:$0xff] %vm395_vm0, %v744_v63 }
 0x11f   : > { %v690_v3 = vpop.xlane.xlu1 %689 }
 0x120   : > { %v746_v4 = vadd.f32 %v690_v3, %v452_v0  ;;  %v687_v5 = vpop.xlane.xlu0 %686 }
 0x121   : > { %v693_v8 = vpop.xlane.xlu2 %692  ;;  %v745_v9 = vadd.f32 %v687_v5, %v451_v1 }
 0x122   : > { %v747_v10 = vadd.f32 %v693_v8, %v453_v2  ;;  %779 = vst.msk [vmem:[#allocation2 + $0x98] sm:$0xff] %vm395_vm0, %v746_v4 }
 0x123   : > { %778 = vst.msk [vmem:[#allocation2 + $0x90] sm:$0xff] %vm395_vm0, %v745_v9 }
 0x124   : > { %780 = vst.msk [vmem:[#allocation2 + $0xa0] sm:$0xff] %vm395_vm0, %v747_v10 }
 0x127   : > { %v699_v13 = vpop.xlane.xlu1 %698 }
 0x128   : > { %v749_v7 = vadd.f32 %v699_v13, %v455_v11  ;;  %v696_v14 = vpop.xlane.xlu0 %695 }
 0x129   : > { %v702_v15 = vpop.xlane.xlu2 %701  ;;  %v748_v16 = vadd.f32 %v696_v14, %v454_v12 }
 0x12a   : > { %v750_v17 = vadd.f32 %v702_v15, %v456_v6  ;;  %782 = vst.msk [vmem:[#allocation2 + $0xb0] sm:$0xff] %vm395_vm0, %v749_v7 }
 0x12b   : > { %781 = vst.msk [vmem:[#allocation2 + $0xa8] sm:$0xff] %vm395_vm0, %v748_v16 }
 0x12c   : > { %783 = vst.msk [vmem:[#allocation2 + $0xb8] sm:$0xff] %vm395_vm0, %v750_v17 }
 0x12f   : > { %v708_v19 = vpop.xlane.xlu1 %707 }
 0x130   : > { %v752_v20 = vadd.f32 %v708_v19, %v458_v18  ;;  %v705_v21 = vpop.xlane.xlu0 %704 }
 0x131   : > { %v711_v22 = vpop.xlane.xlu2 %710  ;;  %v751_v23 = vadd.f32 %v705_v21, %v457_v61 }
 0x132   : > { %v753_v24 = vadd.f32 %v711_v22, %v459_v62  ;;  %785 = vst.msk [vmem:[#allocation2 + $0xc8] sm:$0xff] %vm395_vm0, %v752_v20 }
 0x133   : > { %784 = vst.msk [vmem:[#allocation2 + $0xc0] sm:$0xff] %vm395_vm0, %v751_v23 }
 0x134   : > { %786 = vst.msk [vmem:[#allocation2 + $0xd0] sm:$0xff] %vm395_vm0, %v753_v24 }
 0x137   : > { %v717_v28 = vpop.xlane.xlu1 %716 }
 0x138   : > { %v755_v29 = vadd.f32 %v717_v28, %v461_v25  ;;  %v714_v30 = vpop.xlane.xlu0 %713 }
 0x139   : > { %v720_v31 = vpop.xlane.xlu2 %719  ;;  %v754_v32 = vadd.f32 %v714_v30, %v460_v26 }
 0x13a   : > { %v756_v33 = vadd.f32 %v720_v31, %v462_v27  ;;  %788 = vst.msk [vmem:[#allocation2 + $0xe0] sm:$0xff] %vm395_vm0, %v755_v29 }
 0x13b   : > { %787 = vst.msk [vmem:[#allocation2 + $0xd8] sm:$0xff] %vm395_vm0, %v754_v32 }
 0x13c   : > { %789 = vst.msk [vmem:[#allocation2 + $0xe8] sm:$0xff] %vm395_vm0, %v756_v33 }
 0x13f   : > { %v726_v36 = vpop.xlane.xlu1 %725 }
 0x140   : > { %v758_v37 = vadd.f32 %v726_v36, %v464_v34  ;;  %v723_v38 = vpop.xlane.xlu0 %722 }
 0x141   : > { %v757_v39 = vadd.f32 %v723_v38, %v463_v35 }
 0x142   : > { %791 = vst.msk [vmem:[#allocation2 + $0xf8] sm:$0xff] %vm395_vm0, %v758_v37 }
 0x143   : > { %790 = vst.msk [vmem:[#allocation2 + $0xf0] sm:$0xff] %vm395_vm0, %v757_v39 }
 0x144 PF: > { %v813_v40 = vld [vmem:[#allocation2 + $0x90] sm:$0xff]  ;;  %v811_v41 = vld [vmem:[#allocation2 + $0x80] sm:$0xff]  ;;  %v2213_v43 = vmov 0   ;;  %v814_v44 = vld [vmem:[#allocation2 + $0x98] sm:$0xff]  ;;  %s1830_s18 = sshll.u32 %s2195_s9, 8  ;;  %s2935_s28 = sld [smem:[#allocation30_spill]] }
 0x145   : > { %v795_v42 = vld [vmem:[#allocation2] sm:$0xff]  ;;  %1969 = vset.pattern.permute.xlu2 %v2213_v43  ;;  %1968 = vset.pattern.permute.xlu1 %v2213_v43  ;;  %v812_v45 = vld [vmem:[#allocation2 + $0x88] sm:$0xff]  ;;  %v797_v48 = vld [vmem:[#allocation2 + $0x10] sm:$0xff]  ;;  %s1602_s23 = sshll.u32 %s2461_s5, 4  ;;  %s1589_s9 = scalar_lea.sflag [#allocation8], %s356_s11  ;;  %s1603_s23 = int_to_ptr.vmem [resolvable:$true] %s1602_s23 }
 0x146   : > { %1967 = vset.pattern.permute.xlu0 %v2213_v43  ;;  %920 = vperm.xlu2 %1969, %v813_v40   ;;  %v796_v46 = vld [vmem:[#allocation2 + $0x8] sm:$0xff]  ;;  %v815_v47 = vld [vmem:[#allocation2 + $0xa0] sm:$0xff]  ;;  %v798_v49 = vld [vmem:[#allocation2 + $0x18] sm:$0xff] }
 0x147   : > { %910 = vperm.xlu0 %1967, %v811_v41   ;;  %830 = vperm.xlu1 %1968, %v795_v42   ;;  %v800_v50 = vld [vmem:[#allocation2 + $0x28] sm:$0xff]  ;;  %v799_v52 = vld [vmem:[#allocation2 + $0x20] sm:$0xff]  ;;  %v801_v53 = vld [vmem:[#allocation2 + $0x30] sm:$0xff] }
 0x148   : > { %v816_v51 = vld [vmem:[#allocation2 + $0xa8] sm:$0xff]  ;;  %v817_v54 = vld [vmem:[#allocation2 + $0xb0] sm:$0xff]  ;;  %v818_v55 = vld [vmem:[#allocation2 + $0xb8] sm:$0xff] }
 0x149   : > { %v820_v56 = vld [vmem:[#allocation2 + $0xc8] sm:$0xff]  ;;  %v802_v57 = vld [vmem:[#allocation2 + $0x38] sm:$0xff]  ;;  %v819_v58 = vld [vmem:[#allocation2 + $0xc0] sm:$0xff] }
 0x14a   : > { %v821_v59 = vld [vmem:[#allocation2 + $0xd0] sm:$0xff]  ;;  %v803_v60 = vld [vmem:[#allocation2 + $0x40] sm:$0xff]  ;;  %v804_v63 = vld [vmem:[#allocation2 + $0x48] sm:$0xff]  ;;  %s1601_s19 = scalar_lea.hbm %s2935_s28, %s1830_s18  ;;  %s2111_s26 = scalar_lea.hbm %s2935_s28, 512 }
 0x14b   : > { %v806_v0 = vld [vmem:[#allocation2 + $0x58] sm:$0xff]  ;;  %v805_v2 = vld [vmem:[#allocation2 + $0x50] sm:$0xff]  ;;  %v807_v3 = vld [vmem:[#allocation2 + $0x60] sm:$0xff]  ;;  %s1604_s3 = sshll.u32 %s1601_s19, 4  ;;  %s1605_s3 = int_to_ptr.hbm [resolvable:$true] %s1604_s3 }
 0x14c   : > { %v822_v1 = vld [vmem:[#allocation2 + $0xd8] sm:$0xff]  ;;  %v823_v4 = vld [vmem:[#allocation2 + $0xe0] sm:$0xff]  ;;  %v824_v5 = vld [vmem:[#allocation2 + $0xe8] sm:$0xff]  ;;  %s2105_s29 = sshra.s32 %s1605_s3, 4  ;;  %s2106_s29 = int_to_ptr.hbm [resolvable:$true] %s2105_s29 }
 0x14d   : > { %v826_v8 = vld [vmem:[#allocation2 + $0xf8] sm:$0xff]  ;;  %v808_v9 = vld [vmem:[#allocation2 + $0x68] sm:$0xff]  ;;  %v825_v10 = vld [vmem:[#allocation2 + $0xf0] sm:$0xff]  ;;  %s2107_s30 = scalar_lea.hbm %s2106_s29, 256  ;;  %p2112_p4 = scmp.lt.s32.totalorder %s2106_s29, %s2935_s28 }
 0x14e   : > { %925 = vperm.xlu2 %1969, %v814_v44   ;;  %v1800_v11 = vld [vmem:[#allocation11 + $0x70] sm:$0xf]  ;;  %v1828_v12 = vld [vmem:[#allocation11 + $0x74] sm:$0xf0]  ;;  %v1827_v6 = vld [vmem:[#allocation11 + $0x74] sm:$0xf]  ;;  %p2108_p0 = scmp.ne.s32.totalorder %s2106_s29, %s2107_s30  ;;  %p2113_p2 = scmp.lt.s32.totalorder %s2111_s26, %s2107_s30 }
 0x14f   : > { %915 = vperm.xlu0 %1967, %v812_v45   ;;  %835 = vperm.xlu1 %1968, %v796_v46   ;;  %v1801_v13 = vor.u32 %v1828_v12, %v1800_v11  ;;  %v1802_v7 = vld [vmem:[#allocation11 + $0x78] sm:$0xf0]  ;;  %v809_v15 = vld [vmem:[#allocation2 + $0x70] sm:$0xff]  ;;  %v810_v16 = vld [vmem:[#allocation2 + $0x78] sm:$0xff] }
 0x150   : > { %v1805_v14 = vor.u32 %v1827_v6, %v1802_v7  ;;  %v1792_v17 = vld [vmem:[#allocation11 + $0x60] sm:$0xf]  ;;  %v1826_v18 = vld [vmem:[#allocation11 + $0x64] sm:$0xf0]  ;;  %v1825_v61 = vld [vmem:[#allocation11 + $0x64] sm:$0xf]  ;;  %p2109_p1 = pnand %p2108_p0, %p2324_p10  ;;  %p2114_p5 = por %p2113_p2, %p2112_p4 }
 0x151   : > { %1346 = vmatpush.bf16.msra.mxu0 %v1801_v13  ;;  %1831 = vmatpush.bf16.msra.mxu2 %v1801_v13  ;;  %v1793_v62 = vor.u32 %v1826_v18, %v1792_v17  ;;  %v1794_v19 = vld [vmem:[#allocation11 + $0x68] sm:$0xf0]  ;;  %v1784_v21 = vld [vmem:[#allocation11 + $0x50] sm:$0xf]  ;;  %v1824_v22 = vld [vmem:[#allocation11 + $0x54] sm:$0xf0] }
 0x152   : > { %1435 = vmatpush.bf16.msra.mxu1 %v1805_v14  ;;  %1839 = vmatpush.bf16.msra.mxu3 %v1805_v14  ;;  %v1797_v20 = vor.u32 %v1825_v61, %v1794_v19  ;;  %v1823_v23 = vld [vmem:[#allocation11 + $0x54] sm:$0xf]  ;;  %v1785_v24 = vor.u32 %v1824_v22, %v1784_v21  ;;  %v1786_v25 = vld [vmem:[#allocation11 + $0x58] sm:$0xf0]  ;;  %v1776_v28 = vld [vmem:[#allocation11 + $0x40] sm:$0xf]  ;;  %p2110_p8 = pneg %p2109_p1 }
 0x153   : > { %v1121_v26 = vld [vmem:[#allocation9 + $0x5] sm:$0x1]  ;;  %v1789_v27 = vor.u32 %v1823_v23, %v1786_v25  ;;  %v1822_v29 = vld [vmem:[#allocation11 + $0x44] sm:$0xf0]  ;;  %v1821_v30 = vld [vmem:[#allocation11 + $0x44] sm:$0xf] }
 0x154   : > { %v2602_v31 = vadd.f32 1e-05, %v1121_v26  ;;  %v1777_v32 = vor.u32 %v1822_v29, %v1776_v28  ;;  %v1778_v33 = vld [vmem:[#allocation11 + $0x48] sm:$0xf0]  ;;  %v1768_v35 = vld [vmem:[#allocation11 + $0x30] sm:$0xf]  ;;  %p2115_p7 = pnand %p2114_p5, %p2110_p8 }
 0x155   : > { %1347 = vmatpush.bf16.msra.mxu0 %v1793_v62  ;;  %1832 = vmatpush.bf16.msra.mxu2 %v1793_v62  ;;  %v1781_v34 = vor.u32 %v1821_v30, %v1778_v33  ;;  %v1820_v36 = vld [vmem:[#allocation11 + $0x34] sm:$0xf0]  ;;  %v1819_v37 = vld [vmem:[#allocation11 + $0x34] sm:$0xf]  ;;  %v1770_v39 = vld [vmem:[#allocation11 + $0x38] sm:$0xf0] }
 0x156   : > { %930 = vperm.xlu2 %1969, %v815_v47   ;;  %1436 = vmatpush.bf16.msra.mxu1 %v1797_v20  ;;  %1975 = vrsqrt.f32 %v2602_v31  ;;  %v1769_v38 = vor.u32 %v1820_v36, %v1768_v35  ;;  %v1773_v40 = vor.u32 %v1819_v37, %v1770_v39  ;;  %v1760_v41 = vld [vmem:[#allocation11 + $0x20] sm:$0xf]  ;;  %v1818_v42 = vld [vmem:[#allocation11 + $0x24] sm:$0xf0]  ;;  %v1817_v43 = vld [vmem:[#allocation11 + $0x24] sm:$0xf]  ;;  %vm1129_vm1 = vweird.f32 %v2602_v31 }
 0x157   : > { %840 = vperm.xlu0 %1967, %v797_v48   ;;  %845 = vperm.xlu1 %1968, %v798_v49   ;;  %v1761_v44 = vor.u32 %v1818_v42, %v1760_v41  ;;  %v1762_v45 = vld [vmem:[#allocation11 + $0x28] sm:$0xf0]  ;;  %v1752_v48 = vld [vmem:[#allocation11 + $0x10] sm:$0xf]  ;;  %v1816_v49 = vld [vmem:[#allocation11 + $0x14] sm:$0xf0] }
 0x158   : > { %1840 = vmatpush.bf16.msra.mxu3 %v1797_v20  ;;  %v1765_v46 = vor.u32 %v1817_v43, %v1762_v45  ;;  %v2615_v13 = vld [vmem:[#allocation9 + $0x4] ss:$0 sm:$0xff]  ;;  %v2629_v28 = vld [vmem:[#allocation9 + $0x2] ss:$0 sm:$0xff] }
 0x159   : > { %1348 = vmatpush.bf16.msra.mxu0 %v1785_v24  ;;  %1833 = vmatpush.bf16.msra.mxu2 %v1785_v24 }
 0x15a   : > { %1437 = vmatpush.bf16.msra.mxu1 %v1789_v27 }
 0x15c   : > { %1841 = vmatpush.bf16.msra.mxu3 %v1789_v27  ;;  %v1976_v47 = vpop.eup %1975 }
 0x15d   : > { %1349 = vmatpush.bf16.msra.mxu0 %v1777_v32  ;;  %1834 = vmatpush.bf16.msra.mxu2 %v1777_v32  ;;  %vm1130_vm2 = vweird.f32 %v1976_v47 }
 0x15e   : > { %855 = vperm.xlu2 %1969, %v800_v50   ;;  %1438 = vmatpush.bf16.msra.mxu1 %v1781_v34  ;;  %v1815_v50 = vld [vmem:[#allocation11 + $0x14] sm:$0xf]  ;;  %vm1131_vm3 = vmor %vm1129_vm1, %vm1130_vm2 }
 0x15f   : > { %935 = vperm.xlu0 %1967, %v816_v51   ;;  %850 = vperm.xlu1 %1968, %v799_v52   ;;  %v1753_v51 = vor.u32 %v1816_v49, %v1752_v48  ;;  %v1754_v52 = vld [vmem:[#allocation11 + $0x18] sm:$0xf0] }
 0x160   : > { %1842 = vmatpush.bf16.msra.mxu3 %v1781_v34 }
 0x161   : > { %1350 = vmatpush.bf16.msra.mxu0 %v1769_v38  ;;  %1835 = vmatpush.bf16.msra.mxu2 %v1769_v38  ;;  %v2636_v38 = vld [vmem:[#allocation9 + $0x3] ss:$0 sm:$0xff] }
 0x162   : > { %1439 = vmatpush.bf16.msra.mxu1 %v1773_v40 }
 0x164   : > { %1843 = vmatpush.bf16.msra.mxu3 %v1773_v40 }
 0x165   : > { %1351 = vmatpush.bf16.msra.mxu0 %v1761_v44  ;;  %1836 = vmatpush.bf16.msra.mxu2 %v1761_v44 }
 0x166   : > { %860 = vperm.xlu2 %1969, %v801_v53   ;;  %1440 = vmatpush.bf16.msra.mxu1 %v1765_v46  ;;  %v1124_v53 = vmul.f32 %v1976_v47, %v2602_v31 }
 0x167   : > { %940 = vperm.xlu0 %1967, %v817_v54   ;;  %945 = vperm.xlu1 %1968, %v818_v55   ;;  %v1757_v54 = vor.u32 %v1815_v50, %v1754_v52  ;;  %v1744_v55 = vld [vmem:[#allocation11] sm:$0xf] }
 0x168   : > { %1844 = vmatpush.bf16.msra.mxu3 %v1765_v46 }
 0x169   : > { %1352 = vmatpush.bf16.msra.mxu0 %v1753_v51  ;;  %1837 = vmatpush.bf16.msra.mxu2 %v1753_v51 }
 0x16a   : > { %1441 = vmatpush.bf16.msra.mxu1 %v1757_v54 }
 0x16c   : > { %1845 = vmatpush.bf16.msra.mxu3 %v1757_v54 }
 0x16e   : > { %955 = vperm.xlu2 %1969, %v820_v56   ;;  %v1814_v56 = vld [vmem:[#allocation11 + $0x4] sm:$0xf0] }
 0x16f   : > { %865 = vperm.xlu0 %1967, %v802_v57   ;;  %950 = vperm.xlu1 %1968, %v819_v58   ;;  %v1813_v57 = vld [vmem:[#allocation11 + $0x4] sm:$0xf]  ;;  %v1745_v58 = vor.u32 %v1814_v56, %v1744_v55 }
 0x171   : > { %1353 = vmatpush.bf16.msra.mxu0 %v1745_v58  ;;  %1838 = vmatpush.bf16.msra.mxu2 %v1745_v58 }
 0x176   : > { %960 = vperm.xlu2 %1969, %v821_v59   ;;  %v1746_v59 = vld [vmem:[#allocation11 + $0x8] sm:$0xf0] }
 0x177   : > { %870 = vperm.xlu0 %1967, %v803_v60   ;;  %875 = vperm.xlu1 %1968, %v804_v63   ;;  %v1125_v60 = vmul.f32 %v1976_v47, %v1124_v53  ;;  %v1749_v63 = vor.u32 %v1813_v57, %v1746_v59 }
 0x179   : > { %1442 = vmatpush.bf16.msra.mxu1 %v1749_v63  ;;  %1846 = vmatpush.bf16.msra.mxu3 %v1749_v63 }
 0x17e   : > { %885 = vperm.xlu2 %1969, %v806_v0   ;;  %v1126_v0 = vmul.f32 0.5, %v1125_v60 }
 0x17f   : > { %965 = vperm.xlu0 %1967, %v822_v1   ;;  %880 = vperm.xlu1 %1968, %v805_v2   ;;  %v2606_v1 = vld [vmem:[#allocation9] ss:$0 sm:$0xff] }
 0x180   : > { %v1127_v2 = vsub.f32 1.5, %v1126_v0 }
 0x186   : > { %890 = vperm.xlu2 %1969, %v807_v3  }
 0x187   : > { %970 = vperm.xlu0 %1967, %v823_v4   ;;  %975 = vperm.xlu1 %1968, %v824_v5   ;;  %v2608_v4 = vld [vmem:[#allocation9 + $0x1] ss:$0 sm:$0xff] }
 0x18e   : > { %985 = vperm.xlu2 %1969, %v826_v8  }
 0x18f   : > { %895 = vperm.xlu0 %1967, %v808_v9   ;;  %980 = vperm.xlu1 %1968, %v825_v10   ;;  %v1128_v9 = vmul.f32 %v1976_v47, %v1127_v2 }
 0x191   : > { %v1132_v7 = vsel %vm1131_vm3, %v1976_v47, %v1128_v9 }
 0x192   : > { %v2617_v17 = vperm.slane %v1132_v7, 0 }
 0x197   : > { %900 = vperm.xlu0 %1967, %v809_v15   ;;  %905 = vperm.xlu1 %1968, %v810_v16  }
 0x1a0   : > { %v921_v3 = vpop.permute.xlu2 %920 }
 0x1a1   : > { %v1007_v24 = vmul.f32 %v2606_v1, %v921_v3 }
 0x1a3   : > { %v1041_v33 = vadd.f32 %v2608_v4, %v1007_v24 }
 0x1a5   : > { %v1073_v49 = vmax.f32 %v1041_v33, 0.0 }
 0x1a7   : > { %v1107_v63 = vsub.f32 %v1073_v49, %v2615_v13 }
 0x1a8   : > { %v926_v16 = vpop.permute.xlu2 %925 }
 0x1a9   : > { %v1008_v25 = vmul.f32 %v2606_v1, %v926_v16 }
 0x1ab   : > { %v1042_v34 = vadd.f32 %v2608_v4, %v1008_v25 }
 0x1ad   : > { %v1074_v50 = vmax.f32 %v1042_v34, 0.0 }
 0x1af   : > { %v1108_v0 = vsub.f32 %v1074_v50, %v2615_v13 }
 0x1b0   : > { %v931_v44 = vpop.permute.xlu2 %930 }
 0x1b9   : > { %v911_v5 = vpop.permute.xlu0 %910  ;;  %v831_v8 = vpop.permute.xlu1 %830 }
 0x1ba   : > { %v1005_v10 = vmul.f32 %v2606_v1, %v911_v5  ;;  %v989_v11 = vmul.f32 %v2606_v1, %v831_v8 }
 0x1bc   : > { %v1039_v12 = vadd.f32 %v2608_v4, %v1005_v10  ;;  %v1023_v6 = vadd.f32 %v2608_v4, %v989_v11  ;;  %v1152_v10 = vmul.f32 %v2617_v17, %v1107_v63  ;;  %v1153_v11 = vmul.f32 %v2617_v17, %v1108_v0 }
 0x1be   : > { %v1071_v14 = vmax.f32 %v1039_v12, 0.0  ;;  %v1055_v15 = vmax.f32 %v1023_v6, 0.0  ;;  %v856_v12 = vpop.permute.xlu2 %855 }
 0x1bf   : > { %v994_v7 = vmul.f32 %v2606_v1, %v856_v12 }
 0x1c0   : > { %v1105_v18 = vsub.f32 %v1071_v14, %v2615_v13  ;;  %v1089_v61 = vsub.f32 %v1055_v15, %v2615_v13  ;;  %v1009_v14 = vmul.f32 %v2606_v1, %v931_v44 }
 0x1c1   : > { %v916_v62 = vpop.permute.xlu0 %915  ;;  %v836_v19 = vpop.permute.xlu1 %835 }
 0x1c2   : > { %v1006_v20 = vmul.f32 %v2606_v1, %v916_v62  ;;  %v990_v21 = vmul.f32 %v2606_v1, %v836_v19  ;;  %v1150_v26 = vmul.f32 %v2617_v17, %v1105_v18  ;;  %v1134_v27 = vmul.f32 %v2617_v17, %v1089_v61 }
 0x1c3   : > { %v1186_v19 = vmul.f32 %v2629_v28, %v1152_v10 }
 0x1c4   : > { %v1040_v22 = vadd.f32 %v2608_v4, %v1006_v20  ;;  %v1024_v23 = vadd.f32 %v2608_v4, %v990_v21  ;;  %v1168_v37 = vmul.f32 %v2629_v28, %v1134_v27  ;;  %v1184_v39 = vmul.f32 %v2629_v28, %v1150_v26 }
 0x1c5   : > { %v1187_v20 = vmul.f32 %v2629_v28, %v1153_v11  ;;  %v1028_v21 = vadd.f32 %v2608_v4, %v994_v7 }
 0x1c6   : > { %v1072_v29 = vmax.f32 %v1040_v22, 0.0  ;;  %v1056_v30 = vmax.f32 %v1024_v23, 0.0  ;;  %v1202_v51 = vadd.f32 %v2636_v38, %v1168_v37  ;;  %v1218_v52 = vadd.f32 %v2636_v38, %v1184_v39 }
 0x1c7   : > { %v1043_v22 = vadd.f32 %v2608_v4, %v1009_v14 }
 0x1c8   : > { %v1106_v31 = vsub.f32 %v1072_v29, %v2615_v13  ;;  %v1090_v32 = vsub.f32 %v1056_v30, %v2615_v13  ;;  %v1220_v29 = vadd.f32 %v2636_v38, %v1186_v19  ;;  %v1221_v30 = vadd.f32 %v2636_v38, %v1187_v20 }
 0x1c9   : > { %v841_v35 = vpop.permute.xlu0 %840  ;;  %v846_v36 = vpop.permute.xlu1 %845 }
 0x1ca   : > { %v1151_v40 = vmul.f32 %v2617_v17, %v1106_v31  ;;  %v1135_v41 = vmul.f32 %v2617_v17, %v1090_v32  ;;  %v991_v42 = vmul.f32 %v2606_v1, %v841_v35  ;;  %v992_v43 = vmul.f32 %v2606_v1, %v846_v36 }
 0x1cb   : > { %v1060_v31 = vmax.f32 %v1028_v21, 0.0  ;;  %v1075_v32 = vmax.f32 %v1043_v22, 0.0  ;;  %v1243_v37 = vpack.c.bf16 %v1221_v30, %v1220_v29 }
 0x1cc   : > { %v1025_v45 = vadd.f32 %v2608_v4, %v991_v42  ;;  %v1026_v46 = vadd.f32 %v2608_v4, %v992_v43  ;;  %v1169_v47 = vmul.f32 %v2629_v28, %v1135_v41  ;;  %v1185_v48 = vmul.f32 %v2629_v28, %v1151_v40  ;;  %v861_v43 = vpop.permute.xlu2 %860 }
 0x1cd   : > { %v1094_v39 = vsub.f32 %v1060_v31, %v2615_v13  ;;  %v1109_v40 = vsub.f32 %v1075_v32, %v2615_v13 }
 0x1ce   : > { %v1057_v53 = vmax.f32 %v1025_v45, 0.0  ;;  %v1058_v54 = vmax.f32 %v1026_v46, 0.0  ;;  %v1203_v55 = vadd.f32 %v2636_v38, %v1169_v47  ;;  %v1219_v56 = vadd.f32 %v2636_v38, %v1185_v48 }
 0x1cf   : > { %v1139_v47 = vmul.f32 %v2617_v17, %v1094_v39  ;;  %v995_v48 = vmul.f32 %v2606_v1, %v861_v43  ;;  %v1154_v49 = vmul.f32 %v2617_v17, %v1109_v40 }
 0x1d0   : > { %v1091_v57 = vsub.f32 %v1057_v53, %v2615_v13  ;;  %v1092_v58 = vsub.f32 %v1058_v54, %v2615_v13  ;;  %v1234_v59 = vpack.c.bf16 %v1203_v55, %v1202_v51  ;;  %v1242_v60 = vpack.c.bf16 %v1219_v56, %v1218_v52 }
 0x1d1   : > { %v936_v2 = vpop.permute.xlu0 %935  ;;  %v851_v3 = vpop.permute.xlu1 %850  ;;  %v1029_v56 = vadd.f32 %v2608_v4, %v995_v48 }
 0x1d2   : > { %1354 = vmatmul.bf16.vlgmr.msra.gmra.mxu0 %v1234_v59  ;;  %1394 = vmatmul.bf16.vlgmr.msra.gmra.mxu2 %v1242_v60  ;;  %v1136_v5 = vmul.f32 %v2617_v17, %v1091_v57  ;;  %v1137_v8 = vmul.f32 %v2617_v17, %v1092_v58  ;;  %v993_v9 = vmul.f32 %v2606_v1, %v851_v3 }
 0x1d3   : > { %1443 = vmatmul.bf16.vlgmr.msra.gmra.mxu1 %v1234_v59  ;;  %1483 = vmatmul.bf16.vlgmr.msra.gmra.mxu3 %v1242_v60  ;;  %v1010_v6 = vmul.f32 %v2606_v1, %v936_v2  ;;  %v1173_v57 = vmul.f32 %v2629_v28, %v1139_v47  ;;  %v1188_v58 = vmul.f32 %v2629_v28, %v1154_v49  ;;  %v1061_v3 = vmax.f32 %v1029_v56, 0.0 }
 0x1d4   : > { %v1027_v15 = vadd.f32 %v2608_v4, %v993_v9  ;;  %v1170_v16 = vmul.f32 %v2629_v28, %v1136_v5  ;;  %v1171_v18 = vmul.f32 %v2629_v28, %v1137_v8  ;;  %v956_v8 = vpop.permute.xlu2 %955 }
 0x1d5   : > { %v1044_v61 = vadd.f32 %v2608_v4, %v1010_v6  ;;  %v1207_v5 = vadd.f32 %v2636_v38, %v1173_v57  ;;  %v1222_v9 = vadd.f32 %v2636_v38, %v1188_v58 }
 0x1d6   : > { %v1059_v23 = vmax.f32 %v1027_v15, 0.0  ;;  %v1204_v24 = vadd.f32 %v2636_v38, %v1170_v16  ;;  %v1205_v25 = vadd.f32 %v2636_v38, %v1171_v18  ;;  %v1095_v16 = vsub.f32 %v1061_v3, %v2615_v13 }
 0x1d7   : > { %v1076_v26 = vmax.f32 %v1044_v61, 0.0 }
 0x1d8   : > { %v1093_v33 = vsub.f32 %v1059_v23, %v2615_v13  ;;  %v1235_v34 = vpack.c.bf16 %v1205_v25, %v1204_v24  ;;  %v1140_v22 = vmul.f32 %v2617_v17, %v1095_v16  ;;  %v1014_v23 = vmul.f32 %v2606_v1, %v956_v8 }
 0x1d9   : > { %v941_v62 = vpop.permute.xlu0 %940  ;;  %v946_v27 = vpop.permute.xlu1 %945  ;;  %v1110_v35 = vsub.f32 %v1076_v26, %v2615_v13 }
 0x1da   : > { %v1138_v41 = vmul.f32 %v2617_v17, %v1093_v33  ;;  %v1011_v45 = vmul.f32 %v2606_v1, %v941_v62  ;;  %v1012_v46 = vmul.f32 %v2606_v1, %v946_v27  ;;  %v1174_v32 = vmul.f32 %v2629_v28, %v1140_v22 }
 0x1db   : > { %v1155_v44 = vmul.f32 %v2617_v17, %v1110_v35  ;;  %v1048_v33 = vadd.f32 %v2608_v4, %v1014_v23 }
 0x1dc   : > { %v1172_v52 = vmul.f32 %v2629_v28, %v1138_v41  ;;  %v1045_v53 = vadd.f32 %v2608_v4, %v1011_v45  ;;  %v1046_v54 = vadd.f32 %v2608_v4, %v1012_v46  ;;  %v961_v27 = vpop.permute.xlu2 %960 }
 0x1dd   : > { %v1189_v55 = vmul.f32 %v2629_v28, %v1155_v44  ;;  %v1080_v43 = vmax.f32 %v1048_v33, 0.0 }
 0x1de   : > { %v1206_v60 = vadd.f32 %v2636_v38, %v1172_v52  ;;  %v1077_v63 = vmax.f32 %v1045_v53, 0.0  ;;  %v1078_v0 = vmax.f32 %v1046_v54, 0.0 }
 0x1df   : > { %v1223_v2 = vadd.f32 %v2636_v38, %v1189_v55 }
 0x1e0   : > { %v1236_v11 = vpack.c.bf16 %v1207_v5, %v1206_v60  ;;  %v1111_v12 = vsub.f32 %v1077_v63, %v2615_v13  ;;  %v1112_v6 = vsub.f32 %v1078_v0, %v2615_v13 }
 0x1e1   : > { %v866_v36 = vpop.permute.xlu0 %865  ;;  %v951_v50 = vpop.permute.xlu1 %950  ;;  %v1244_v15 = vpack.c.bf16 %v1223_v2, %v1222_v9 }
 0x1e2   : > { %1359 = vmatmul.bf16.gmra.mxu0 %v1235_v34  ;;  %1399 = vmatmul.bf16.gmra.mxu2 %v1243_v37  ;;  %v996_v42 = vmul.f32 %v2606_v1, %v866_v36  ;;  %v1156_v19 = vmul.f32 %v2617_v17, %v1111_v12  ;;  %v1157_v20 = vmul.f32 %v2617_v17, %v1112_v6 }
 0x1e3   : > { %1448 = vmatmul.bf16.gmra.mxu1 %v1235_v34  ;;  %1488 = vmatmul.bf16.gmra.mxu3 %v1243_v37  ;;  %v1013_v21 = vmul.f32 %v2606_v1, %v951_v50  ;;  %v1114_v50 = vsub.f32 %v1080_v43, %v2615_v13 }
 0x1e4   : > { %v1030_v51 = vadd.f32 %v2608_v4, %v996_v42  ;;  %v1190_v30 = vmul.f32 %v2629_v28, %v1156_v19  ;;  %v1191_v31 = vmul.f32 %v2629_v28, %v1157_v20  ;;  %v1208_v42 = vadd.f32 %v2636_v38, %v1174_v32 }
 0x1e5   : > { %v1047_v29 = vadd.f32 %v2608_v4, %v1013_v21  ;;  %v1159_v58 = vmul.f32 %v2617_v17, %v1114_v50 }
 0x1e6   : > { %v1062_v59 = vmax.f32 %v1030_v51, 0.0  ;;  %v1224_v40 = vadd.f32 %v2636_v38, %v1190_v30  ;;  %v1225_v41 = vadd.f32 %v2636_v38, %v1191_v31  ;;  %v886_v51 = vpop.permute.xlu2 %885 }
 0x1e7   : > { %v1079_v37 = vmax.f32 %v1047_v29, 0.0  ;;  %v1000_v57 = vmul.f32 %v2606_v1, %v886_v51 }
 0x1e8   : > { %v1096_v10 = vsub.f32 %v1062_v59, %v2615_v13  ;;  %v1245_v49 = vpack.c.bf16 %v1225_v41, %v1224_v40  ;;  %v1015_v59 = vmul.f32 %v2606_v1, %v961_v27 }
 0x1e9   : > { %v871_v7 = vpop.permute.xlu0 %870  ;;  %v876_v14 = vpop.permute.xlu1 %875  ;;  %v1113_v47 = vsub.f32 %v1079_v37, %v2615_v13  ;;  %v1034_v8 = vadd.f32 %v2608_v4, %v1000_v57 }
 0x1ea   : > { %v1141_v18 = vmul.f32 %v2617_v17, %v1096_v10  ;;  %v997_v61 = vmul.f32 %v2606_v1, %v871_v7  ;;  %v998_v62 = vmul.f32 %v2606_v1, %v876_v14  ;;  %v1049_v9 = vadd.f32 %v2608_v4, %v1015_v59 }
 0x1eb   : > { %v1158_v55 = vmul.f32 %v2617_v17, %v1113_v47  ;;  %v1193_v10 = vmul.f32 %v2629_v28, %v1159_v58  ;;  %v1066_v16 = vmax.f32 %v1034_v8, 0.0 }
 0x1ec   : > { %v1031_v24 = vadd.f32 %v2608_v4, %v997_v61  ;;  %v1032_v25 = vadd.f32 %v2608_v4, %v998_v62  ;;  %v1175_v26 = vmul.f32 %v2629_v28, %v1141_v18  ;;  %v1081_v18 = vmax.f32 %v1049_v9, 0.0 }
 0x1ed   : > { %v1192_v5 = vmul.f32 %v2629_v28, %v1158_v55  ;;  %v1227_v61 = vadd.f32 %v2636_v38, %v1193_v10  ;;  %v1100_v23 = vsub.f32 %v1066_v16, %v2615_v13 }
 0x1ee   : > { %v1063_v34 = vmax.f32 %v1031_v24, 0.0  ;;  %v1064_v35 = vmax.f32 %v1032_v25, 0.0  ;;  %v1209_v36 = vadd.f32 %v2636_v38, %v1175_v26  ;;  %v1115_v24 = vsub.f32 %v1081_v18, %v2615_v13  ;;  %v891_v25 = vpop.permute.xlu2 %890 }
 0x1ef   : > { %v1145_v32 = vmul.f32 %v2617_v17, %v1100_v23  ;;  %v1001_v33 = vmul.f32 %v2606_v1, %v891_v25 }
 0x1f0   : > { %v1097_v44 = vsub.f32 %v1063_v34, %v2615_v13  ;;  %v1098_v45 = vsub.f32 %v1064_v35, %v2615_v13  ;;  %v1237_v46 = vpack.c.bf16 %v1209_v36, %v1208_v42  ;;  %v1160_v34 = vmul.f32 %v2617_v17, %v1115_v24 }
 0x1f1   : > { %v966_v39 = vpop.permute.xlu0 %965  ;;  %v881_v48 = vpop.permute.xlu1 %880  ;;  %v1035_v42 = vadd.f32 %v2608_v4, %v1001_v33  ;;  %v1179_v43 = vmul.f32 %v2629_v28, %v1145_v32 }
 0x1f2   : > { %1364 = vmatmul.bf16.gmra.mxu0 %v1236_v11  ;;  %1404 = vmatmul.bf16.gmra.mxu2 %v1244_v15  ;;  %v1142_v52 = vmul.f32 %v2617_v17, %v1097_v44  ;;  %v1143_v53 = vmul.f32 %v2617_v17, %v1098_v45  ;;  %v999_v54 = vmul.f32 %v2606_v1, %v881_v48 }
 0x1f3   : > { %1453 = vmatmul.bf16.gmra.mxu1 %v1236_v11  ;;  %1493 = vmatmul.bf16.gmra.mxu3 %v1244_v15  ;;  %v1016_v56 = vmul.f32 %v2606_v1, %v966_v39  ;;  %v1226_v15 = vadd.f32 %v2636_v38, %v1192_v5  ;;  %v1194_v44 = vmul.f32 %v2629_v28, %v1160_v34  ;;  %v1067_v50 = vmax.f32 %v1035_v42, 0.0 }
 0x1f4   : > { %v1033_v63 = vadd.f32 %v2608_v4, %v999_v54  ;;  %v1176_v0 = vmul.f32 %v2629_v28, %v1142_v52  ;;  %v1177_v2 = vmul.f32 %v2629_v28, %v1143_v53  ;;  %v1213_v51 = vadd.f32 %v2636_v38, %v1179_v43 }
 0x1f5   : > { %v1050_v3 = vadd.f32 %v2608_v4, %v1016_v56  ;;  %v1246_v22 = vpack.c.bf16 %v1227_v61, %v1226_v15  ;;  %v1228_v52 = vadd.f32 %v2636_v38, %v1194_v44 }
 0x1f6   : > { %v1065_v11 = vmax.f32 %v1033_v63, 0.0  ;;  %v1210_v12 = vadd.f32 %v2636_v38, %v1176_v0  ;;  %v1211_v6 = vadd.f32 %v2636_v38, %v1177_v2  ;;  %v986_v63 = vpop.permute.xlu2 %985 }
 0x1f7   : > { %v1082_v7 = vmax.f32 %v1050_v3, 0.0 }
 0x1f8   : > { %v1099_v62 = vsub.f32 %v1065_v11, %v2615_v13  ;;  %v1238_v19 = vpack.c.bf16 %v1211_v6, %v1210_v12  ;;  %v1020_v11 = vmul.f32 %v2606_v1, %v986_v63 }
 0x1f9   : > { %v971_v60 = vpop.permute.xlu0 %970  ;;  %v976_v14 = vpop.permute.xlu1 %975  ;;  %v1116_v20 = vsub.f32 %v1082_v7, %v2615_v13 }
 0x1fa   : > { %v1144_v26 = vmul.f32 %v2617_v17, %v1099_v62  ;;  %v1017_v30 = vmul.f32 %v2606_v1, %v971_v60  ;;  %v1018_v31 = vmul.f32 %v2606_v1, %v976_v14  ;;  %v1101_v60 = vsub.f32 %v1067_v50, %v2615_v13 }
 0x1fb   : > { %v1161_v29 = vmul.f32 %v2617_v17, %v1116_v20  ;;  %v1054_v61 = vadd.f32 %v2608_v4, %v1020_v11 }
 0x1fc   : > { %v1178_v37 = vmul.f32 %v2629_v28, %v1144_v26  ;;  %v1051_v39 = vadd.f32 %v2608_v4, %v1017_v30  ;;  %v1052_v40 = vadd.f32 %v2608_v4, %v1018_v31  ;;  %v1146_v10 = vmul.f32 %v2617_v17, %v1101_v60 }
 0x1fd   : > { %v1195_v41 = vmul.f32 %v2629_v28, %v1161_v29  ;;  %v1086_v24 = vmax.f32 %v1054_v61, 0.0 }
 0x1fe   : > { %v1083_v47 = vmax.f32 %v1051_v39, 0.0  ;;  %v1084_v48 = vmax.f32 %v1052_v40, 0.0  ;;  %v1180_v18 = vmul.f32 %v2629_v28, %v1146_v10 }
 0x1ff   : > { %v1120_v30 = vsub.f32 %v1086_v24, %v2615_v13 }
 0x200   : > { %v1117_v55 = vsub.f32 %v1083_v47, %v2615_v13  ;;  %v1118_v56 = vsub.f32 %v1084_v48, %v2615_v13  ;;  %v1214_v23 = vadd.f32 %v2636_v38, %v1180_v18 }
 0x201   : > { %v896_v21 = vpop.permute.xlu0 %895  ;;  %v981_v35 = vpop.permute.xlu1 %980  ;;  %v1165_v34 = vmul.f32 %v2617_v17, %v1120_v30 }
 0x202   : > { %1369 = vmatmul.bf16.gmra.mxu0 %v1237_v46  ;;  %1409 = vmatmul.bf16.gmra.mxu2 %v1245_v49  ;;  %v1002_v27 = vmul.f32 %v2606_v1, %v896_v21  ;;  %v1162_v5 = vmul.f32 %v2617_v17, %v1117_v55  ;;  %v1163_v8 = vmul.f32 %v2617_v17, %v1118_v56 }
 0x203   : > { %1458 = vmatmul.bf16.gmra.mxu1 %v1237_v46  ;;  %1498 = vmatmul.bf16.gmra.mxu3 %v1245_v49  ;;  %v1212_v46 = vadd.f32 %v2636_v38, %v1178_v37  ;;  %v1229_v49 = vadd.f32 %v2636_v38, %v1195_v41  ;;  %v1019_v9 = vmul.f32 %v2606_v1, %v981_v35 }
 0x204   : > { %v1036_v36 = vadd.f32 %v2608_v4, %v1002_v27  ;;  %v1196_v15 = vmul.f32 %v2629_v28, %v1162_v5  ;;  %v1197_v16 = vmul.f32 %v2629_v28, %v1163_v8 }
 0x205   : > { %v1239_v54 = vpack.c.bf16 %v1213_v51, %v1212_v46  ;;  %v1247_v59 = vpack.c.bf16 %v1229_v49, %v1228_v52  ;;  %v1053_v14 = vadd.f32 %v2608_v4, %v1019_v9 }
 0x206   : > { %v1068_v45 = vmax.f32 %v1036_v36, 0.0  ;;  %v1230_v21 = vadd.f32 %v2636_v38, %v1196_v15 }
 0x207   : > { %v1085_v20 = vmax.f32 %v1053_v14, 0.0 }
 0x208   : > { %v1102_v53 = vsub.f32 %v1068_v45, %v2615_v13 }
 0x209   : > { %v901_v57 = vpop.permute.xlu0 %900  ;;  %v906_v58 = vpop.permute.xlu1 %905  ;;  %v1119_v29 = vsub.f32 %v1085_v20, %v2615_v13 }
 0x20a   : > { %v1147_v0 = vmul.f32 %v2617_v17, %v1102_v53  ;;  %v1003_v2 = vmul.f32 %v2606_v1, %v901_v57  ;;  %v1004_v3 = vmul.f32 %v2606_v1, %v906_v58 }
 0x20b   : > { %v1164_v33 = vmul.f32 %v2617_v17, %v1119_v29 }
 0x20c   : > { %v1037_v12 = vadd.f32 %v2608_v4, %v1003_v2  ;;  %v1038_v6 = vadd.f32 %v2608_v4, %v1004_v3  ;;  %v1181_v7 = vmul.f32 %v2629_v28, %v1147_v0 }
 0x20d   : > { %v1198_v37 = vmul.f32 %v2629_v28, %v1164_v33 }
 0x20e   : > { %v1069_v62 = vmax.f32 %v1037_v12, 0.0  ;;  %v1215_v1 = vadd.f32 %v2636_v38, %v1181_v7 }
 0x20f   : > { %v1232_v41 = vadd.f32 %v2636_v38, %v1198_v37 }
 0x210   : > { %v1103_v25 = vsub.f32 %v1069_v62, %v2615_v13  ;;  %v1240_v27 = vpack.c.bf16 %v1215_v1, %v1214_v23 }
 0x212   : > { %1374 = vmatmul.bf16.gmra.mxu0 %v1238_v19  ;;  %1414 = vmatmul.bf16.gmra.mxu2 %v1246_v22  ;;  %v1148_v31 = vmul.f32 %v2617_v17, %v1103_v25 }
 0x213   : > { %1463 = vmatmul.bf16.gmra.mxu1 %v1238_v19  ;;  %1503 = vmatmul.bf16.gmra.mxu3 %v1246_v22  ;;  %v1070_v19 = vmax.f32 %v1038_v6, 0.0  ;;  %v1231_v22 = vadd.f32 %v2636_v38, %v1197_v16 }
 0x214   : > { %v1182_v35 = vmul.f32 %v2629_v28, %v1148_v31 }
 0x215   : > { %v1104_v26 = vsub.f32 %v1070_v19, %v2615_v13  ;;  %v1248_v4 = vpack.c.bf16 %v1231_v22, %v1230_v21  ;;  %v1199_v13 = vmul.f32 %v2629_v28, %v1165_v34 }
 0x216   : > { %v1216_v39 = vadd.f32 %v2636_v38, %v1182_v35 }
 0x217   : > { %v1149_v32 = vmul.f32 %v2617_v17, %v1104_v26  ;;  %v1233_v42 = vadd.f32 %v2636_v38, %v1199_v13 }
 0x219   : > { %v1183_v36 = vmul.f32 %v2629_v28, %v1149_v32  ;;  %v1249_v17 = vpack.c.bf16 %v1233_v42, %v1232_v41 }
 0x21b   : > { %v1217_v40 = vadd.f32 %v2636_v38, %v1183_v36 }
 0x21d   : > { %v1241_v43 = vpack.c.bf16 %v1217_v40, %v1216_v39 }
 0x222   : > { %1379 = vmatmul.bf16.gmra.mxu0 %v1239_v54  ;;  %1419 = vmatmul.bf16.gmra.mxu2 %v1247_v59 }
 0x223   : > { %1468 = vmatmul.bf16.gmra.mxu1 %v1239_v54  ;;  %1508 = vmatmul.bf16.gmra.mxu3 %v1247_v59 }
 0x232   : > { %1384 = vmatmul.bf16.gmra.mxu0 %v1240_v27  ;;  %1424 = vmatmul.bf16.gmra.mxu2 %v1248_v4 }
 0x233   : > { %1473 = vmatmul.bf16.gmra.mxu1 %v1240_v27  ;;  %1513 = vmatmul.bf16.gmra.mxu3 %v1248_v4 }
 0x242   : > { %1389 = vmatmul.bf16.gmra.mxu0 %v1241_v43  ;;  %1429 = vmatmul.bf16.gmra.mxu2 %v1249_v17 }
 0x243   : > { %1478 = vmatmul.bf16.gmra.mxu1 %v1241_v43  ;;  %1518 = vmatmul.bf16.gmra.mxu3 %v1249_v17 }
 0x24f   : > { %v1355_v44 = vpop.f32.mrf.mxu0 }
 0x250   : > { %v1444_v45 = vpop.f32.mrf.mxu1 }
 0x251   : > { %v1524_v46 = vpack.c.bf16 %v1444_v45, %v1355_v44 }
 0x253   : > { %1556 = vst [vmem:[%s2461_s5] sm:$0xff] %v1524_v46 }
 0x255   : > { %v1395_v28 = vpop.f32.mrf.mxu2 }
 0x256   : > { %v1484_v47 = vpop.f32.mrf.mxu3 }
 0x257   : > { %v1357_v48 = vpop.f32.mrf.mxu0  ;;  %v1540_v49 = vpack.c.bf16 %v1484_v47, %v1395_v28 }
 0x258   : > { %v1446_v50 = vpop.f32.mrf.mxu1 }
 0x259   : > { %v1525_v38 = vpack.c.bf16 %v1446_v50, %v1357_v48  ;;  %1572 = vst [vmem:[%s2461_s5 + $0x80] sm:$0xff] %v1540_v49 }
 0x25b   : > { %1557 = vst [vmem:[%s2461_s5 + $0x8] sm:$0xff] %v1525_v38 }
 0x25d   : > { %v1397_v51 = vpop.f32.mrf.mxu2 }
 0x25e   : > { %v1486_v52 = vpop.f32.mrf.mxu3 }
 0x25f   : > { %v1360_v53 = vpop.f32.mrf.mxu0  ;;  %v1541_v54 = vpack.c.bf16 %v1486_v52, %v1397_v51 }
 0x260   : > { %v1449_v55 = vpop.f32.mrf.mxu1 }
 0x261   : > { %v1526_v56 = vpack.c.bf16 %v1449_v55, %v1360_v53  ;;  %1573 = vst [vmem:[%s2461_s5 + $0x88] sm:$0xff] %v1541_v54 }
 0x263   : > { %1558 = vst [vmem:[%s2461_s5 + $0x10] sm:$0xff] %v1526_v56 }
 0x265   : > { %v1400_v57 = vpop.f32.mrf.mxu2 }
 0x266   : > { %v1489_v58 = vpop.f32.mrf.mxu3 }
 0x267   : > { %v1362_v59 = vpop.f32.mrf.mxu0  ;;  %v1542_v60 = vpack.c.bf16 %v1489_v58, %v1400_v57 }
 0x268   : > { %v1451_v63 = vpop.f32.mrf.mxu1 }
 0x269   : > { %v1527_v0 = vpack.c.bf16 %v1451_v63, %v1362_v59  ;;  %1574 = vst [vmem:[%s2461_s5 + $0x90] sm:$0xff] %v1542_v60 }
 0x26b   : > { %1559 = vst [vmem:[%s2461_s5 + $0x18] sm:$0xff] %v1527_v0 }
 0x26d   : > { %v1402_v2 = vpop.f32.mrf.mxu2 }
 0x26e   : > { %v1491_v3 = vpop.f32.mrf.mxu3 }
 0x26f   : > { %v1365_v5 = vpop.f32.mrf.mxu0  ;;  %v1543_v8 = vpack.c.bf16 %v1491_v3, %v1402_v2 }
 0x270   : > { %v1454_v9 = vpop.f32.mrf.mxu1 }
 0x271   : > { %v1528_v10 = vpack.c.bf16 %v1454_v9, %v1365_v5  ;;  %1575 = vst [vmem:[%s2461_s5 + $0x98] sm:$0xff] %v1543_v8 }
 0x273   : > { %1560 = vst [vmem:[%s2461_s5 + $0x20] sm:$0xff] %v1528_v10 }
 0x275   : > { %v1405_v11 = vpop.f32.mrf.mxu2 }
 0x276   : > { %v1494_v12 = vpop.f32.mrf.mxu3 }
 0x277   : > { %v1367_v6 = vpop.f32.mrf.mxu0  ;;  %v1544_v7 = vpack.c.bf16 %v1494_v12, %v1405_v11 }
 0x278   : > { %v1456_v14 = vpop.f32.mrf.mxu1 }
 0x279   : > { %v1529_v15 = vpack.c.bf16 %v1456_v14, %v1367_v6  ;;  %1576 = vst [vmem:[%s2461_s5 + $0xa0] sm:$0xff] %v1544_v7 }
 0x27b   : > { %1561 = vst [vmem:[%s2461_s5 + $0x28] sm:$0xff] %v1529_v15 }
 0x27d   : > { %v1407_v16 = vpop.f32.mrf.mxu2 }
 0x27e   : > { %v1496_v18 = vpop.f32.mrf.mxu3 }
 0x27f   : > { %v1370_v61 = vpop.f32.mrf.mxu0  ;;  %v1545_v62 = vpack.c.bf16 %v1496_v18, %v1407_v16 }
 0x280   : > { %v1459_v19 = vpop.f32.mrf.mxu1 }
 0x281   : > { %v1530_v1 = vpack.c.bf16 %v1459_v19, %v1370_v61  ;;  %1577 = vst [vmem:[%s2461_s5 + $0xa8] sm:$0xff] %v1545_v62 }
 0x283   : > { %1562 = vst [vmem:[%s2461_s5 + $0x30] sm:$0xff] %v1530_v1 }
 0x285   : > { %v1410_v20 = vpop.f32.mrf.mxu2 }
 0x286   : > { %v1499_v21 = vpop.f32.mrf.mxu3 }
 0x287   : > { %v1372_v22 = vpop.f32.mrf.mxu0  ;;  %v1546_v23 = vpack.c.bf16 %v1499_v21, %v1410_v20 }
 0x288   : > { %v1461_v24 = vpop.f32.mrf.mxu1 }
 0x289   : > { %v1531_v25 = vpack.c.bf16 %v1461_v24, %v1372_v22  ;;  %1578 = vst [vmem:[%s2461_s5 + $0xb0] sm:$0xff] %v1546_v23 }
 0x28b   : > { %1563 = vst [vmem:[%s2461_s5 + $0x38] sm:$0xff] %v1531_v25 }
 0x28d   : > { %v1412_v26 = vpop.f32.mrf.mxu2 }
 0x28e   : > { %v1501_v27 = vpop.f32.mrf.mxu3 }
 0x28f   : > { %v1375_v29 = vpop.f32.mrf.mxu0  ;;  %v1547_v4 = vpack.c.bf16 %v1501_v27, %v1412_v26 }
 0x290   : > { %v1464_v30 = vpop.f32.mrf.mxu1 }
 0x291   : > { %v1532_v31 = vpack.c.bf16 %v1464_v30, %v1375_v29  ;;  %1579 = vst [vmem:[%s2461_s5 + $0xb8] sm:$0xff] %v1547_v4 }
 0x293   : > { %1564 = vst [vmem:[%s2461_s5 + $0x40] sm:$0xff] %v1532_v31 }
 0x295   : > { %v1415_v32 = vpop.f32.mrf.mxu2 }
 0x296   : > { %v1504_v33 = vpop.f32.mrf.mxu3 }
 0x297   : > { %v1377_v34 = vpop.f32.mrf.mxu0  ;;  %v1548_v35 = vpack.c.bf16 %v1504_v33, %v1415_v32 }
 0x298   : > { %v1466_v36 = vpop.f32.mrf.mxu1 }
 0x299   : > { %v1533_v37 = vpack.c.bf16 %v1466_v36, %v1377_v34  ;;  %1580 = vst [vmem:[%s2461_s5 + $0xc0] sm:$0xff] %v1548_v35 }
 0x29b   : > { %1565 = vst [vmem:[%s2461_s5 + $0x48] sm:$0xff] %v1533_v37 }
 0x29d   : > { %v1417_v13 = vpop.f32.mrf.mxu2 }
 0x29e   : > { %v1506_v39 = vpop.f32.mrf.mxu3 }
 0x29f   : > { %v1380_v40 = vpop.f32.mrf.mxu0  ;;  %v1549_v41 = vpack.c.bf16 %v1506_v39, %v1417_v13 }
 0x2a0   : > { %v1469_v42 = vpop.f32.mrf.mxu1 }
 0x2a1   : > { %v1534_v43 = vpack.c.bf16 %v1469_v42, %v1380_v40  ;;  %1581 = vst [vmem:[%s2461_s5 + $0xc8] sm:$0xff] %v1549_v41 }
 0x2a3   : > { %1566 = vst [vmem:[%s2461_s5 + $0x50] sm:$0xff] %v1534_v43 }
 0x2a5   : > { %v1420_v17 = vpop.f32.mrf.mxu2 }
 0x2a6   : > { %v1509_v44 = vpop.f32.mrf.mxu3 }
 0x2a7   : > { %v1382_v45 = vpop.f32.mrf.mxu0  ;;  %v1550_v46 = vpack.c.bf16 %v1509_v44, %v1420_v17 }
 0x2a8   : > { %v1471_v28 = vpop.f32.mrf.mxu1 }
 0x2a9   : > { %v1535_v47 = vpack.c.bf16 %v1471_v28, %v1382_v45  ;;  %1582 = vst [vmem:[%s2461_s5 + $0xd0] sm:$0xff] %v1550_v46 }
 0x2ab   : > { %1567 = vst [vmem:[%s2461_s5 + $0x58] sm:$0xff] %v1535_v47 }
 0x2ad   : > { %v1422_v48 = vpop.f32.mrf.mxu2 }
 0x2ae   : > { %v1511_v49 = vpop.f32.mrf.mxu3 }
 0x2af   : > { %v1385_v50 = vpop.f32.mrf.mxu0  ;;  %v1551_v38 = vpack.c.bf16 %v1511_v49, %v1422_v48 }
 0x2b0   : > { %v1474_v51 = vpop.f32.mrf.mxu1 }
 0x2b1   : > { %v1536_v52 = vpack.c.bf16 %v1474_v51, %v1385_v50  ;;  %1583 = vst [vmem:[%s2461_s5 + $0xd8] sm:$0xff] %v1551_v38 }
 0x2b3   : > { %1568 = vst [vmem:[%s2461_s5 + $0x60] sm:$0xff] %v1536_v52 }
 0x2b5   : > { %v1425_v53 = vpop.f32.mrf.mxu2 }
 0x2b6   : > { %v1514_v54 = vpop.f32.mrf.mxu3 }
 0x2b7   : > { %v1387_v55 = vpop.f32.mrf.mxu0  ;;  %v1552_v56 = vpack.c.bf16 %v1514_v54, %v1425_v53 }
 0x2b8   : > { %v1476_v57 = vpop.f32.mrf.mxu1 }
 0x2b9   : > { %v1537_v58 = vpack.c.bf16 %v1476_v57, %v1387_v55  ;;  %1584 = vst [vmem:[%s2461_s5 + $0xe0] sm:$0xff] %v1552_v56 }
 0x2bb   : > { %1569 = vst [vmem:[%s2461_s5 + $0x68] sm:$0xff] %v1537_v58 }
 0x2bd   : > { %v1427_v59 = vpop.f32.mrf.mxu2 }
 0x2be   : > { %v1516_v60 = vpop.f32.mrf.mxu3 }
 0x2bf   : > { %v1390_v63 = vpop.f32.mrf.mxu0  ;;  %v1553_v0 = vpack.c.bf16 %v1516_v60, %v1427_v59 }
 0x2c0   : > { %v1479_v2 = vpop.f32.mrf.mxu1 }
 0x2c1   : > { %v1538_v3 = vpack.c.bf16 %v1479_v2, %v1390_v63  ;;  %1585 = vst [vmem:[%s2461_s5 + $0xe8] sm:$0xff] %v1553_v0 }
 0x2c3   : > { %1570 = vst [vmem:[%s2461_s5 + $0x70] sm:$0xff] %v1538_v3 }
 0x2c5   : > { %v1430_v5 = vpop.f32.mrf.mxu2 }
 0x2c6   : > { %v1519_v8 = vpop.f32.mrf.mxu3 }
 0x2c7   : > { %v1392_v9 = vpop.f32.mrf.mxu0  ;;  %v1554_v10 = vpack.c.bf16 %v1519_v8, %v1430_v5 }
 0x2c8   : > { %v1481_v11 = vpop.f32.mrf.mxu1 }
 0x2c9   : > { %v1539_v12 = vpack.c.bf16 %v1481_v11, %v1392_v9  ;;  %1586 = vst [vmem:[%s2461_s5 + $0xf0] sm:$0xff] %v1554_v10 }
 0x2cb   : > { %1571 = vst [vmem:[%s2461_s5 + $0x78] sm:$0xff] %v1539_v12 }
 0x2cd   : > { %v1432_v6 = vpop.f32.mrf.mxu2 }
 0x2ce   : > { %v1521_v7 = vpop.f32.mrf.mxu3 }
 0x2cf   : > { %v1555_v14 = vpack.c.bf16 %v1521_v7, %v1432_v6 }
 0x2d1   : > { %1587 = vst [vmem:[%s2461_s5 + $0xf8] sm:$0xff] %v1555_v14 }
 0x2d2   : > { %2118 = shalt.err (!%p2115_p7)
}
 0x2d3   : > { %s2214_s11 = smov 128   ;;  %s2215_s22 = smov 8  }
 0x2d4   : > { %1859 = dma.vmem_to_hbm [thread:$0]  (%p2324_p10), %s1603_s23, 4096, %s1605_s3, %s1589_s9, %s2214_s11, %s2214_s11, %s2215_s22  }
 0x2d5 PF: > { %s2937_s1 = sld [smem:[#allocation19_spill]] }
 0x2d6   : > { %s2939_s14 = sld [smem:[#allocation22_spill]] }
 0x2db   : > { %s1619_s13 = sand.u32 1, %s2937_s1  }
 0x2dc   : > { %p2940_p9 = scmp.ge.s32.totalorder %s2939_s14, 2  ;;  %s1620_s12 = scalar_lea.sflag [#allocation8], %s1619_s13 }
 0x2de   : > { %p1875_p11 = pnand %p2940_p9, %p2329_p12 }
 0x2e0   : > { %p1876_p13 = pneg %p1875_p11 }
 0x2e2   : > { %2166 = dma.done.wait (%p1876_p13), %s1620_s12, 4096  }
 0x2e3   : > { %2168 = vsyncadd (%p1876_p13), %s1620_s12, 4294963200  ;;  %s36_s11 = sadd.s32 1, %s2939_s14   ;;  %s2941_s15 = sld [smem:[#allocation20_spill]] }
 0x2e4   : > { %p33_p3 = scmp.ge.s32.totalorder %s36_s11, 4   ;;  %s2942_s30 = sld [smem:[#allocation26_spill]] }
 0x2e5   : > { %s2943_s9 = sld [smem:[#allocation21_spill]]  ;;  %s2945_s29 = smov %s2175_s0 }
 0x2e6   : > { %s2944_s10 = sld [smem:[#allocation25_spill]]  ;;  %s2947_s1 = smov %s2187_s7 }
 0x2e7   : > { %s2948_s7 = smov %s2191_s8  ;;  %s2949_s8 = smov %s2383_s6 }
 0x2e8   :  { %35 = sbr.rel (!%p33_p3) target bundleno = 19 (0x13), region = 104 }
 0x2e9   : > { %s2946_s0 = smov %s2941_s15 }
 0x2ed   :  { %1626 = vsyncpa [#allocation7], 1 }
 0x2ee   :  { %1628 = vsyncpa [#allocation7 + $0x1], 1 }
 0x2ef   :  { %1629 = vsyncpa [#allocation10], 1 }
 0x2f0   :  { %1630 = vsyncpa [#allocation8], 1 }
 0x2f1   :  { %1632 = vsyncpa [#allocation8 + $0x1], 1 }

</bundles_post_ra>
